<compile_context>
chip_gen: v5e
topology: v5e:2x2
jax: 0.10.0
libtpu: 0.0.40
codegen_flags: <defaults>
</compile_context>

<pallas_src>
import functools

import jax
import jax.numpy as jnp
from jax.experimental import pallas as pl
from jax.experimental.pallas import tpu as pltpu


def _dw_sep_kernel(x_ref, dww_ref, dwb_ref, pww_ref, pwb_ref, o_ref, *, H, W):
    """Fused depthwise 3x3 (pad=1, groups=Cin) + bias + pointwise 1x1 + bias.

    x_ref  : (H+2, W+2, Cin)  halo-padded input image (one batch element)
    dww_ref: (9, Cin)         depthwise taps, tap index = kh*3 + kw
    dwb_ref: (1, Cin)         depthwise bias
    pww_ref: (Cin, Cp)        pointwise weight, Cout zero-padded to Cp (lane dense)
    pwb_ref: (1, Cp)          pointwise bias, zero-padded
    o_ref  : (H*W, Cp)        fused output
    """
    Cin = dww_ref.shape[1]
    w = dww_ref[...]                                       # load all 9 taps once

    # Depthwise 3x3 on the VPU: 9 halo-shifted views, per-channel weights.
    acc = x_ref[0:H, 0:W, :] * w[0:1, :]
    for t in range(1, 9):
        kh, kw = t // 3, t % 3
        acc = acc + x_ref[kh:kh + H, kw:kw + W, :] * w[t:t + 1, :]

    dw = (acc + dwb_ref[...]).reshape(H * W, Cin)          # stays resident in VMEM
    # Pointwise 1x1 on the MXU, f32 accumulate, lane-dense Cp output.
    y = jnp.dot(dw, pww_ref[...], preferred_element_type=jnp.float32)
    o_ref[...] = y + pwb_ref[...]                          # unmasked vst


def depthwise_separable_conv(x_nchw, dw_w, dw_b, pw_w, pw_b):
    """PyTorch-equivalent forward.

    x_nchw: (N, Cin, H, W)
    dw_w  : (Cin, 1, 3, 3)    nn.Conv2d(nin, nin, 3, padding=1, groups=nin).weight
    dw_b  : (Cin,)
    pw_w  : (Cout, Cin, 1, 1) nn.Conv2d(nin, nout, 1).weight
    pw_b  : (Cout,)
    returns (N, Cout, H, W)
    """
    N, Cin, H, W = x_nchw.shape
    Cout = pw_w.shape[0]

    # NCHW -> NHWC, halo pad for the 3x3 depthwise.
    x = jnp.transpose(x_nchw, (0, 2, 3, 1)).astype(jnp.float32)
    xp = jnp.pad(x, ((0, 0), (1, 1), (1, 1), (0, 0)))

    # Kernel-side weight layouts.
    w9 = jnp.transpose(dw_w[:, 0].astype(jnp.float32), (1, 2, 0)).reshape(9, Cin)
    pwk = jnp.transpose(pw_w[:, :, 0, 0].astype(jnp.float32), (1, 0))    # (Cin, Cout)

    # Zero-pad Cout to a multiple of 128 for lane-dense output stores.
    Cp = ((Cout + 127) // 128) * 128
    pwk = jnp.pad(pwk, ((0, 0), (0, Cp - Cout)))
    pwb = jnp.pad(pw_b.astype(jnp.float32), (0, Cp - Cout)).reshape(1, Cp)
    dwb = dw_b.astype(jnp.float32).reshape(1, Cin)

    kernel = functools.partial(_dw_sep_kernel, H=H, W=W)
    flops = 2 * N * H * W * Cin * (9 + Cp)
    bytes_accessed = 4 * (xp.size + w9.size + dwb.size + pwk.size + pwb.size
                          + N * H * W * Cp)

    out = pl.pallas_call(
        kernel,
        out_shape=jax.ShapeDtypeStruct((N, H * W, Cp), jnp.float32),
        grid=(N,),
        in_specs=[
            pl.BlockSpec((None, H + 2, W + 2, Cin), lambda n: (n, 0, 0, 0)),
            pl.BlockSpec((9, Cin), lambda n: (0, 0)),
            pl.BlockSpec((1, Cin), lambda n: (0, 0)),
            pl.BlockSpec((Cin, Cp), lambda n: (0, 0)),
            pl.BlockSpec((1, Cp), lambda n: (0, 0)),
        ],
        out_specs=pl.BlockSpec((None, H * W, Cp), lambda n: (n, 0, 0)),
        compiler_params=pltpu.CompilerParams(
            dimension_semantics=("parallel",)),
        cost_estimate=pl.CostEstimate(
            flops=flops, transcendentals=0, bytes_accessed=bytes_accessed),
    )(xp, w9, dwb, pwk, pwb)

    out = out[:, :, :Cout].reshape(N, H, W, Cout)
    return jnp.transpose(out, (0, 3, 1, 2))                # NHWC -> NCHW
    # TODO(synk): for very large H*W, tile rows inside each image with a manual
    # halo DMA (memory_space=pl.ANY + make_async_copy) instead of one whole
    # image per grid step.


def _reference(x_nchw, dw_w, dw_b, pw_w, pw_b):
    """Plain-JAX reference (matches the PyTorch module)."""
    Cin = dw_w.shape[0]
    y = jax.lax.conv_general_dilated(
        x_nchw, dw_w, window_strides=(1, 1), padding=((1, 1), (1, 1)),
        dimension_numbers=("NCHW", "OIHW", "NCHW"),
        feature_group_count=Cin, precision=jax.lax.Precision.HIGHEST)
    y = y + dw_b[None, :, None, None]
    z = jax.lax.conv_general_dilated(
        y, pw_w, window_strides=(1, 1), padding="VALID",
        dimension_numbers=("NCHW", "OIHW", "NCHW"),
        precision=jax.lax.Precision.HIGHEST)
    return z + pw_b[None, :, None, None]


if __name__ == "__main__":
    key = jax.random.PRNGKey(0)
    k1, k2, k3, k4, k5 = jax.random.split(key, 5)

    N, Cin, Cout, H, W = 2, 32, 64, 16, 16          # small, module-consistent
    x = jax.random.normal(k1, (N, Cin, H, W), jnp.float32)
    dw_w = jax.random.normal(k2, (Cin, 1, 3, 3), jnp.float32) / 3.0
    dw_b = jax.random.normal(k3, (Cin,), jnp.float32) * 0.1
    pw_w = jax.random.normal(k4, (Cout, Cin, 1, 1), jnp.float32) / jnp.sqrt(Cin)
    pw_b = jax.random.normal(k5, (Cout,), jnp.float32) * 0.1

    out = jax.jit(depthwise_separable_conv)(x, dw_w, dw_b, pw_w, pw_b)
    out = jax.block_until_ready(out)

    assert out.shape == (N, Cout, H, W)
    assert bool(jnp.all(jnp.isfinite(out)))
    ref = _reference(x, dw_w, dw_b, pw_w, pw_b)
    max_err = float(jnp.max(jnp.abs(out - ref)))
    assert max_err < 3e-2, f"max abs error vs reference: {max_err}"
    print("KERNEL_OK")
</pallas_src>

<mosaic_0001>
module attributes {stable_mosaic.version = 11 : i64} {
  func.func @_dw_sep_kernel(%arg0: i32, %arg1: memref<1x18x18x32xf32, #tpu.memory_space<vmem>>, %arg2: memref<9x32xf32, #tpu.memory_space<vmem>>, %arg3: memref<1x32xf32, #tpu.memory_space<vmem>>, %arg4: memref<32x128xf32, #tpu.memory_space<vmem>>, %arg5: memref<1x128xf32, #tpu.memory_space<vmem>>, %arg6: memref<1x256x128xf32, #tpu.memory_space<vmem>>) attributes {dimension_semantics = [#tpu.dimension_semantics<parallel>], iteration_bounds = array<i64: 2>, scalar_prefetch = 0 : i64, scratch_operands = 0 : i64, tpu.core_type = #tpu.core_type<tc>, window_params = [{transform_indices = @transform_0, window_bounds = array<i64: 1, 18, 18, 32>}, {pipeline_mode = #tpu.pipeline_mode<synchronous>, transform_indices = @transform_1, window_bounds = array<i64: 9, 32>}, {pipeline_mode = #tpu.pipeline_mode<synchronous>, transform_indices = @transform_2, window_bounds = array<i64: 1, 32>}, {pipeline_mode = #tpu.pipeline_mode<synchronous>, transform_indices = @transform_3, window_bounds = array<i64: 32, 128>}, {pipeline_mode = #tpu.pipeline_mode<synchronous>, transform_indices = @transform_4, window_bounds = array<i64: 1, 128>}, {transform_indices = @transform_5, window_bounds = array<i64: 1, 256, 128>}]} {
    %c0 = arith.constant 0 : index
    %c0_0 = arith.constant 0 : index
    %0 = vector.load %arg2[%c0, %c0_0] : memref<9x32xf32, #tpu.memory_space<vmem>>, vector<9x32xf32>
    %c0_1 = arith.constant 0 : index
    %c0_2 = arith.constant 0 : index
    %c0_3 = arith.constant 0 : index
    %c0_4 = arith.constant 0 : index
    %1 = vector.load %arg1[%c0_1, %c0_2, %c0_3, %c0_4] : memref<1x18x18x32xf32, #tpu.memory_space<vmem>>, vector<1x16x16x32xf32>
    %2 = vector.shape_cast %1 : vector<1x16x16x32xf32> to vector<16x16x32xf32>
    %3 = vector.extract_strided_slice %0 {offsets = [0, 0], sizes = [1, 32], strides = [1, 1]} : vector<9x32xf32> to vector<1x32xf32>
    %4 = vector.shape_cast %3 : vector<1x32xf32> to vector<1x1x32xf32>
    %5 = vector.broadcast %4 : vector<1x1x32xf32> to vector<16x16x32xf32>
    %6 = arith.mulf %2, %5 : vector<16x16x32xf32>
    %c0_5 = arith.constant 0 : index
    %c0_6 = arith.constant 0 : index
    %c1 = arith.constant 1 : index
    %c0_7 = arith.constant 0 : index
    %7 = vector.load %arg1[%c0_5, %c0_6, %c1, %c0_7] : memref<1x18x18x32xf32, #tpu.memory_space<vmem>>, vector<1x16x16x32xf32>
    %8 = vector.shape_cast %7 : vector<1x16x16x32xf32> to vector<16x16x32xf32>
    %9 = vector.extract_strided_slice %0 {offsets = [1, 0], sizes = [1, 32], strides = [1, 1]} : vector<9x32xf32> to vector<1x32xf32>
    %10 = vector.shape_cast %9 : vector<1x32xf32> to vector<1x1x32xf32>
    %11 = vector.broadcast %10 : vector<1x1x32xf32> to vector<16x16x32xf32>
    %12 = arith.mulf %8, %11 : vector<16x16x32xf32>
    %13 = arith.addf %6, %12 : vector<16x16x32xf32>
    %c0_8 = arith.constant 0 : index
    %c0_9 = arith.constant 0 : index
    %c2 = arith.constant 2 : index
    %c0_10 = arith.constant 0 : index
    %14 = vector.load %arg1[%c0_8, %c0_9, %c2, %c0_10] : memref<1x18x18x32xf32, #tpu.memory_space<vmem>>, vector<1x16x16x32xf32>
    %15 = vector.shape_cast %14 : vector<1x16x16x32xf32> to vector<16x16x32xf32>
    %16 = vector.extract_strided_slice %0 {offsets = [2, 0], sizes = [1, 32], strides = [1, 1]} : vector<9x32xf32> to vector<1x32xf32>
    %17 = vector.shape_cast %16 : vector<1x32xf32> to vector<1x1x32xf32>
    %18 = vector.broadcast %17 : vector<1x1x32xf32> to vector<16x16x32xf32>
    %19 = arith.mulf %15, %18 : vector<16x16x32xf32>
    %20 = arith.addf %13, %19 : vector<16x16x32xf32>
    %c0_11 = arith.constant 0 : index
    %c1_12 = arith.constant 1 : index
    %c0_13 = arith.constant 0 : index
    %c0_14 = arith.constant 0 : index
    %21 = vector.load %arg1[%c0_11, %c1_12, %c0_13, %c0_14] : memref<1x18x18x32xf32, #tpu.memory_space<vmem>>, vector<1x16x16x32xf32>
    %22 = vector.shape_cast %21 : vector<1x16x16x32xf32> to vector<16x16x32xf32>
    %23 = vector.extract_strided_slice %0 {offsets = [3, 0], sizes = [1, 32], strides = [1, 1]} : vector<9x32xf32> to vector<1x32xf32>
    %24 = vector.shape_cast %23 : vector<1x32xf32> to vector<1x1x32xf32>
    %25 = vector.broadcast %24 : vector<1x1x32xf32> to vector<16x16x32xf32>
    %26 = arith.mulf %22, %25 : vector<16x16x32xf32>
    %27 = arith.addf %20, %26 : vector<16x16x32xf32>
    %c0_15 = arith.constant 0 : index
    %c1_16 = arith.constant 1 : index
    %c1_17 = arith.constant 1 : index
    %c0_18 = arith.constant 0 : index
    %28 = vector.load %arg1[%c0_15, %c1_16, %c1_17, %c0_18] : memref<1x18x18x32xf32, #tpu.memory_space<vmem>>, vector<1x16x16x32xf32>
    %29 = vector.shape_cast %28 : vector<1x16x16x32xf32> to vector<16x16x32xf32>
    %30 = vector.extract_strided_slice %0 {offsets = [4, 0], sizes = [1, 32], strides = [1, 1]} : vector<9x32xf32> to vector<1x32xf32>
    %31 = vector.shape_cast %30 : vector<1x32xf32> to vector<1x1x32xf32>
    %32 = vector.broadcast %31 : vector<1x1x32xf32> to vector<16x16x32xf32>
    %33 = arith.mulf %29, %32 : vector<16x16x32xf32>
    %34 = arith.addf %27, %33 : vector<16x16x32xf32>
    %c0_19 = arith.constant 0 : index
    %c1_20 = arith.constant 1 : index
    %c2_21 = arith.constant 2 : index
    %c0_22 = arith.constant 0 : index
    %35 = vector.load %arg1[%c0_19, %c1_20, %c2_21, %c0_22] : memref<1x18x18x32xf32, #tpu.memory_space<vmem>>, vector<1x16x16x32xf32>
    %36 = vector.shape_cast %35 : vector<1x16x16x32xf32> to vector<16x16x32xf32>
    %37 = vector.extract_strided_slice %0 {offsets = [5, 0], sizes = [1, 32], strides = [1, 1]} : vector<9x32xf32> to vector<1x32xf32>
    %38 = vector.shape_cast %37 : vector<1x32xf32> to vector<1x1x32xf32>
    %39 = vector.broadcast %38 : vector<1x1x32xf32> to vector<16x16x32xf32>
    %40 = arith.mulf %36, %39 : vector<16x16x32xf32>
    %41 = arith.addf %34, %40 : vector<16x16x32xf32>
    %c0_23 = arith.constant 0 : index
    %c2_24 = arith.constant 2 : index
    %c0_25 = arith.constant 0 : index
    %c0_26 = arith.constant 0 : index
    %42 = vector.load %arg1[%c0_23, %c2_24, %c0_25, %c0_26] : memref<1x18x18x32xf32, #tpu.memory_space<vmem>>, vector<1x16x16x32xf32>
    %43 = vector.shape_cast %42 : vector<1x16x16x32xf32> to vector<16x16x32xf32>
    %44 = vector.extract_strided_slice %0 {offsets = [6, 0], sizes = [1, 32], strides = [1, 1]} : vector<9x32xf32> to vector<1x32xf32>
    %45 = vector.shape_cast %44 : vector<1x32xf32> to vector<1x1x32xf32>
    %46 = vector.broadcast %45 : vector<1x1x32xf32> to vector<16x16x32xf32>
    %47 = arith.mulf %43, %46 : vector<16x16x32xf32>
    %48 = arith.addf %41, %47 : vector<16x16x32xf32>
    %c0_27 = arith.constant 0 : index
    %c2_28 = arith.constant 2 : index
    %c1_29 = arith.constant 1 : index
    %c0_30 = arith.constant 0 : index
    %49 = vector.load %arg1[%c0_27, %c2_28, %c1_29, %c0_30] : memref<1x18x18x32xf32, #tpu.memory_space<vmem>>, vector<1x16x16x32xf32>
    %50 = vector.shape_cast %49 : vector<1x16x16x32xf32> to vector<16x16x32xf32>
    %51 = vector.extract_strided_slice %0 {offsets = [7, 0], sizes = [1, 32], strides = [1, 1]} : vector<9x32xf32> to vector<1x32xf32>
    %52 = vector.shape_cast %51 : vector<1x32xf32> to vector<1x1x32xf32>
    %53 = vector.broadcast %52 : vector<1x1x32xf32> to vector<16x16x32xf32>
    %54 = arith.mulf %50, %53 : vector<16x16x32xf32>
    %55 = arith.addf %48, %54 : vector<16x16x32xf32>
    %c0_31 = arith.constant 0 : index
    %c2_32 = arith.constant 2 : index
    %c2_33 = arith.constant 2 : index
    %c0_34 = arith.constant 0 : index
    %56 = vector.load %arg1[%c0_31, %c2_32, %c2_33, %c0_34] : memref<1x18x18x32xf32, #tpu.memory_space<vmem>>, vector<1x16x16x32xf32>
    %57 = vector.shape_cast %56 : vector<1x16x16x32xf32> to vector<16x16x32xf32>
    %58 = vector.extract_strided_slice %0 {offsets = [8, 0], sizes = [1, 32], strides = [1, 1]} : vector<9x32xf32> to vector<1x32xf32>
    %59 = vector.shape_cast %58 : vector<1x32xf32> to vector<1x1x32xf32>
    %60 = vector.broadcast %59 : vector<1x1x32xf32> to vector<16x16x32xf32>
    %61 = arith.mulf %57, %60 : vector<16x16x32xf32>
    %62 = arith.addf %55, %61 : vector<16x16x32xf32>
    %c0_35 = arith.constant 0 : index
    %c0_36 = arith.constant 0 : index
    %63 = vector.load %arg3[%c0_35, %c0_36] : memref<1x32xf32, #tpu.memory_space<vmem>>, vector<1x32xf32>
    %64 = vector.shape_cast %63 : vector<1x32xf32> to vector<1x1x32xf32>
    %65 = vector.broadcast %64 : vector<1x1x32xf32> to vector<16x16x32xf32>
    %66 = arith.addf %62, %65 : vector<16x16x32xf32>
    %67 = vector.shape_cast %66 : vector<16x16x32xf32> to vector<256x32xf32>
    %c0_37 = arith.constant 0 : index
    %c0_38 = arith.constant 0 : index
    %68 = vector.load %arg4[%c0_37, %c0_38] : memref<32x128xf32, #tpu.memory_space<vmem>>, vector<32x128xf32>
    %cst = arith.constant dense<0.000000e+00> : vector<256x128xf32>
    %69 = tpu.matmul %67, %68, %cst {dimension_numbers = #tpu.dot_dimension_numbers<[1], [0], [0], [1], [0, 0, 1, 1], [], []>} : vector<256x32xf32>, vector<32x128xf32>, vector<256x128xf32> -> vector<256x128xf32>
    %c0_39 = arith.constant 0 : index
    %c0_40 = arith.constant 0 : index
    %70 = vector.load %arg5[%c0_39, %c0_40] : memref<1x128xf32, #tpu.memory_space<vmem>>, vector<1x128xf32>
    %71 = vector.broadcast %70 : vector<1x128xf32> to vector<256x128xf32>
    %72 = arith.addf %69, %71 : vector<256x128xf32>
    %c0_41 = arith.constant 0 : index
    %c0_42 = arith.constant 0 : index
    %c0_43 = arith.constant 0 : index
    %73 = vector.load %arg6[%c0_41, %c0_42, %c0_43] : memref<1x256x128xf32, #tpu.memory_space<vmem>>, vector<1x256x128xf32>
    %74 = vector.shape_cast %73 : vector<1x256x128xf32> to vector<256x128xf32>
    %75 = vector.shape_cast %72 : vector<256x128xf32> to vector<1x256x128xf32>
    tpu.vector_store %arg6[%c0_41, %c0_42, %c0_43], %75 {strides = array<i32>} : memref<1x256x128xf32, #tpu.memory_space<vmem>>, vector<1x256x128xf32>,
    return
  }
  func.func @transform_0(%arg0: i32) -> (i32, i32, i32, i32) {
    %c0_i32 = arith.constant 0 : i32
    %c0_i32_0 = arith.constant 0 : i32
    %c0_i32_1 = arith.constant 0 : i32
    %c0_i32_2 = arith.constant 0 : i32
    return %arg0, %c0_i32, %c0_i32_0, %c0_i32_1 : i32, i32, i32, i32
  }
  func.func @transform_1(%arg0: i32) -> (i32, i32) {
    %c0_i32 = arith.constant 0 : i32
    %c0_i32_0 = arith.constant 0 : i32
    %c0_i32_1 = arith.constant 0 : i32
    return %c0_i32, %c0_i32_0 : i32, i32
  }
  func.func @transform_2(%arg0: i32) -> (i32, i32) {
    %c0_i32 = arith.constant 0 : i32
    %c0_i32_0 = arith.constant 0 : i32
    %c0_i32_1 = arith.constant 0 : i32
    return %c0_i32, %c0_i32_0 : i32, i32
  }
  func.func @transform_3(%arg0: i32) -> (i32, i32) {
    %c0_i32 = arith.constant 0 : i32
    %c0_i32_0 = arith.constant 0 : i32
    %c0_i32_1 = arith.constant 0 : i32
    return %c0_i32, %c0_i32_0 : i32, i32
  }
  func.func @transform_4(%arg0: i32) -> (i32, i32) {
    %c0_i32 = arith.constant 0 : i32
    %c0_i32_0 = arith.constant 0 : i32
    %c0_i32_1 = arith.constant 0 : i32
    return %c0_i32, %c0_i32_0 : i32, i32
  }
  func.func @transform_5(%arg0: i32) -> (i32, i32, i32) {
    %c0_i32 = arith.constant 0 : i32
    %c0_i32_0 = arith.constant 0 : i32
    %c0_i32_1 = arith.constant 0 : i32
    return %arg0, %c0_i32, %c0_i32_0 : i32, i32, i32
  }
}

</mosaic_0001>

<bundles_post_ra>
// kernel: depthwise_separable_conv.1
= control target key start
LH: loop header
LB: loop body
LE: loop exit
PB: predicated region body
PF: predicated region fallthrough
CT: control target
= control target key end

     0   :  { %10 = vsyncpa [#allocation3], 0  ;;  %s2969_s0 = inlined_call_operand.vmem [shape: f32[2,18,18,32], index: 0, kind: input, shape index: {}]   ;;  %s2970_s1 = inlined_call_operand.vmem [shape: f32[9,32], index: 1, kind: input, shape index: {}]   ;;  %s2971_s2 = inlined_call_operand.vmem [shape: f32[1,32], index: 2, kind: input, shape index: {}]   ;;  %s2972_s3 = inlined_call_operand.vmem [shape: f32[32,128], index: 3, kind: input, shape index: {}]   ;;  %s2973_s4 = inlined_call_operand.vmem [shape: f32[1,128], index: 4, kind: input, shape index: {}]   ;;  %s2974_s5 = inlined_call_operand.hbm [shape: f32[2,256,128], index: 5, kind: output, shape index: {}]  }
   0x1   :  { %12 = vsyncpa [#allocation3 + $0x1], 0  ;;  %s1823_s18 = smov 0   ;;  %s1825_s19 = smov 0  }
   0x2   :  { %s1827_s20 = smov 0   ;;  %s1829_s21 = smov 0  }
   0x3 LB: > { %s1844_s22 = sadd.s32 4294967295, %s1789_s21   ;;  %s1432_s23 = sadd.s32 4294967294, %s1789_s21   ;;  %s1789_s21 = sphi %s1829_s21, %s3110_s21   ;;  %s1785_s20 = sphi %s1827_s20, %s3109_s20   ;;  %s1781_s19 = sphi %s1825_s19, %s3108_s19   ;;  %s1777_s18 = sphi %s1823_s18, %s3107_s18  }
   0x4   : > { %s1848_s24 = sadd.s32 1, %s1789_s21   ;;  %s135_s25 = sadd.s32 1, %s1785_s20 }
   0x5   : > { %s132_s26 = ssub.s32 %s1789_s21, %s1848_s24  ;;  %p145_p0 = scmp.ne.s32.totalorder %s1785_s20, %s1781_s19 }
   0x6   : > { %p133_p1 = scmp.eq.s32.totalorder %s132_s26, 0  ;;  %p146_p2 = scmp.eq.s32.totalorder %s1844_s22, 1 }
   0x7   : > { %p151_p3 = scmp.ne.s32.totalorder %s1781_s19, %s1777_s18  ;;  %p152_p4 = scmp.eq.s32.totalorder %s1432_s23, 1 }
   0x8   : > { %s1859_s27 = scalar_select %p133_p1, %s1785_s20, %s135_s25  }
   0x9   : > { %p1861_p5 = por %p146_p2, %p145_p0  ;;  %p1865_p6 = por %p152_p4, %p151_p3 }
   0xa   : > { %p1435_p7 = scmp.ge.s32.totalorder %s1789_s21, 1  ;;  %p190_p8 = scmp.lt.s32.totalorder %s1789_s21, 3 }
   0xc   : > { %p191_p9 = pnand %p1435_p7, %p190_p8 }
   0xe   : > { %194 = sbr.rel (%p191_p9) target bundleno = 316 (0x13c), region = 40 }
  0x13   : > { %v1107_v0 = vld [vmem:[%s2972_s3 + $0x18] sm:$0xff]  ;;  %v1106_v1 = vld [vmem:[%s2972_s3 + $0x10] sm:$0xff]  ;;  %p218_p10 = scmp.lt.s32.totalorder %s1844_s22, 1  ;;  %v223_v2 = vld [vmem:[%s2970_s1] sm:$0xff]  ;;  %vm1112_vm0 = vcmask 261120   ;;  %s215_s12 = sand.u32 1, %s1781_s19  }
  0x14   : > { %1669 = vmatpush.msra.mxu2 %v1107_v0  ;;  %1670 = vmatpush.msra.mxu3 %v1107_v0  ;;  %v1105_v3 = vld [vmem:[%s2972_s3 + $0x8] sm:$0xff]  ;;  %v1104_v4 = vld [vmem:[%s2972_s3] sm:$0xff]  ;;  %v1888_v5 = vperm.slane %v223_v2, 0  ;;  %v1890_v6 = vperm.slane %v223_v2, 1  ;;  %v1892_v7 = vperm.slane %v223_v2, 2  ;;  %v1899_v8 = vperm.slane %v223_v2, 3 }
  0x15   : > { %1221 = vmatpush.msra.mxu0 %v1107_v0  ;;  %1668 = vmatpush.msra.mxu1 %v1107_v0  ;;  %s219_s13 = scalar_select %p218_p10, %s1844_s22, 1  ;;  %v1901_v9 = vperm.slane %v223_v2, 4  ;;  %v1903_v10 = vperm.slane %v223_v2, 5  ;;  %v1908_v11 = vld [vmem:[%s2970_s1 + $0x8] ss:$0 sm:$0xff]  ;;  %v1913_v15 = vperm.slane %v223_v2, 6 }
  0x16   : > { %1672 = vmatpush.msra.mxu2 %v1106_v1  ;;  %1673 = vmatpush.msra.mxu3 %v1106_v1  ;;  %v1923_v22 = vperm.slane %v223_v2, 7  ;;  %s1667_s17 = sshll.u32 %s1844_s22, 8  ;;  %s1355_s22 = scalar_lea.sflag [#allocation3], %s215_s12 }
  0x17   : > { %s1680_s16 = smul.u32 432, %s219_s13  ;;  %1222 = vmatpush.msra.mxu0 %v1106_v1  ;;  %1671 = vmatpush.msra.mxu1 %v1106_v1  ;;  %s1436_s13 = sshll.u32 %s215_s12, 8 }
  0x18   : > { %1675 = vmatpush.msra.mxu2 %v1105_v3  ;;  %1676 = vmatpush.msra.mxu3 %v1105_v3  ;;  %s1366_s26 = scalar_lea.hbm %s2974_s5, %s1667_s17  ;;  %s1747_s11 = scalar_lea.hbm %s2974_s5, 512 }
  0x19   : > { %s1897_s25 = scalar_lea.vmem %s2969_s0, %s1680_s16  ;;  %1223 = vmatpush.msra.mxu0 %v1105_v3  ;;  %1674 = vmatpush.msra.mxu1 %v1105_v3  ;;  %s2870_s16 = scalar_lea.vmem [#allocation2], %s1436_s13 }
  0x1a   : > { %1678 = vmatpush.msra.mxu2 %v1104_v4  ;;  %1679 = vmatpush.msra.mxu3 %v1104_v4  ;;  %v241_v12 = vld [vmem:[%s1897_s25 + $0xc0] sm:$0xff]  ;;  %v1454_v19 = vld [vmem:[%s1897_s25 + $0xd8] sm:$0xff]  ;;  %v1926_v23 = vld [vmem:[%s1897_s25 + $0xf0] sm:$0xff]  ;;  %s1367_s30 = sshll.u32 %s2870_s16, 4  ;;  %s1369_s6 = sshll.u32 %s1366_s26, 4  ;;  %s1368_s30 = int_to_ptr.vmem [resolvable:$true] %s1367_s30  ;;  %s1370_s6 = int_to_ptr.hbm [resolvable:$true] %s1369_s6 }
  0x1b   : > { %v306_v13 = vld [vmem:[%s1897_s25 + $0xc1] sm:$0xff]  ;;  %v274_v16 = vmul.f32 %v1888_v5, %v241_v12  ;;  %v1486_v20 = vld [vmem:[%s1897_s25 + $0xd9] sm:$0xff]  ;;  %1224 = vmatpush.msra.mxu0 %v1104_v4  ;;  %1677 = vmatpush.msra.mxu1 %v1104_v4  ;;  %3028 = vst [vmem:[#allocation5_spill] sm:$0xff] %v1926_v23  ;;  %v1929_v24 = vld [vmem:[%s1897_s25 + $0xf1] sm:$0xff]  ;;  %v534_v27 = vmul.f32 %v1454_v19, %v1899_v8  ;;  %s1741_s7 = sshra.s32 %s1370_s6, 4  ;;  %s1742_s7 = int_to_ptr.hbm [resolvable:$true] %s1741_s7 }
  0x1c   : > { %v403_v14 = vld [vmem:[%s1897_s25 + $0xc2] sm:$0xff]  ;;  %v339_v17 = vmul.f32 %v1890_v6, %v306_v13  ;;  %v1921_v21 = vld [vmem:[%s1897_s25 + $0xda] sm:$0xff]  ;;  %v1932_v25 = vld [vmem:[%s1897_s25 + $0xf2] sm:$0xff]  ;;  %v631_v28 = vmul.f32 %v1486_v20, %v1901_v9  ;;  %v1963_v39 = vmul.f32 %v1454_v19, %v1888_v5  ;;  %v826_v41 = vmul.f32 %v1926_v23, %v1913_v15  ;;  %s1743_s8 = scalar_lea.hbm %s1742_s7, 256  ;;  %p1748_p0 = scmp.lt.s32.totalorder %s1742_s7, %s2974_s5 }
  0x1d   : > { %v436_v18 = vmul.f32 %v1892_v7, %v403_v14  ;;  %3029 = vst [vmem:[#allocation6_spill] sm:$0xff] %v1932_v25  ;;  %v728_v29 = vmul.f32 %v1921_v21, %v1903_v10  ;;  %v1939_v30 = vld [vmem:[%s1897_s25 + $0x120] sm:$0xff]  ;;  %v1954_v36 = vld [vmem:[%s1897_s25 + $0x138] sm:$0xff]  ;;  %v923_v42 = vmul.f32 %v1929_v24, %v1923_v22  ;;  %v1971_v43 = vmul.f32 %v1908_v11, %v1932_v25  ;;  %v1974_v44 = vld [vmem:[%s1897_s25 + $0x150] sm:$0xff]  ;;  %p1744_p11 = scmp.ne.s32.totalorder %s1742_s7, %s1743_s8  ;;  %p1749_p1 = scmp.lt.s32.totalorder %s1747_s11, %s1743_s8 }
  0x1e   : > { %v371_v26 = vadd.f32 %v339_v17, %v274_v16  ;;  %3030 = vst [vmem:[#allocation7_spill] sm:$0xff] %v1939_v30  ;;  %v1942_v31 = vld [vmem:[%s1897_s25 + $0x121] sm:$0xff]  ;;  %v282_v33 = vmul.f32 %v1888_v5, %v1939_v30  ;;  %v1957_v37 = vld [vmem:[%s1897_s25 + $0x139] sm:$0xff]  ;;  %v1977_v45 = vld [vmem:[%s1897_s25 + $0x151] sm:$0xff]  ;;  %v542_v48 = vmul.f32 %v1954_v36, %v1899_v8  ;;  %v1990_v53 = vmul.f32 %v1486_v20, %v1890_v6 }
  0x1f   : > { %3031 = vst [vmem:[#allocation8_spill] sm:$0xff] %v1942_v31  ;;  %v1945_v32 = vld [vmem:[%s1897_s25 + $0x122] sm:$0xff]  ;;  %v347_v34 = vmul.f32 %v1890_v6, %v1942_v31  ;;  %v1960_v38 = vld [vmem:[%s1897_s25 + $0x13a] sm:$0xff]  ;;  %v1980_v46 = vld [vmem:[%s1897_s25 + $0x152] sm:$0xff]  ;;  %v639_v49 = vmul.f32 %v1957_v37, %v1901_v9  ;;  %v834_v62 = vmul.f32 %v1974_v44, %v1913_v15  ;;  %v931_v63 = vmul.f32 %v1977_v45, %v1923_v22  ;;  %p1745_p12 = pnand %p1744_p11, %p1861_p5  ;;  %p1750_p2 = por %p1749_p1, %p1748_p0 }
  0x20   : > { %3032 = vst [vmem:[#allocation9_spill] sm:$0xff] %v1945_v32  ;;  %v444_v35 = vmul.f32 %v1892_v7, %v1945_v32  ;;  %v468_v40 = vadd.f32 %v436_v18, %v371_v26  ;;  %v225_v50 = vld [vmem:[%s1897_s25] sm:$0xff]  ;;  %v1996_v58 = vld [vmem:[%s1897_s25 + $0x18] sm:$0xff]  ;;  %v736_v61 = vmul.f32 %v1960_v38, %v1903_v10  ;;  %v2011_v1 = vld [vmem:[%s1897_s25 + $0x30] sm:$0xff]  ;;  %v2015_v3 = vmul.f32 %v1908_v11, %v1980_v46 }
  0x21   : > { %v379_v47 = vadd.f32 %v347_v34, %v282_v33  ;;  %v290_v51 = vld [vmem:[%s1897_s25 + $0x1] sm:$0xff]  ;;  %v258_v55 = vmul.f32 %v1888_v5, %v225_v50  ;;  %v1999_v59 = vld [vmem:[%s1897_s25 + $0x19] sm:$0xff]  ;;  %v518_v12 = vmul.f32 %v1996_v58, %v1899_v8  ;;  %v2031_v19 = vld [vmem:[%s1897_s25 + $0x31] sm:$0xff]  ;;  %v810_v50 = vmul.f32 %v2011_v1, %v1913_v15  ;;  %p1746_p13 = pneg %p1745_p12 }
  0x22   : > { %v387_v52 = vld [vmem:[%s1897_s25 + $0x2] sm:$0xff]  ;;  %v566_v54 = vadd.f32 %v534_v27, %v468_v40  ;;  %v323_v56 = vmul.f32 %v1890_v6, %v290_v51  ;;  %v2008_v0 = vld [vmem:[%s1897_s25 + $0x1a] sm:$0xff]  ;;  %v615_v18 = vmul.f32 %v1999_v59, %v1901_v9  ;;  %v2034_v20 = vld [vmem:[%s1897_s25 + $0x32] sm:$0xff] }
  0x23   : > { %v420_v57 = vmul.f32 %v1892_v7, %v387_v52  ;;  %v476_v60 = vadd.f32 %v444_v35, %v379_v47  ;;  %v2020_v13 = vld [vmem:[%s1897_s25 + $0x60] sm:$0xff]  ;;  %v712_v35 = vmul.f32 %v2008_v0, %v1903_v10  ;;  %v242_v52 = vld [vmem:[%s1897_s25 + $0xc8] sm:$0xff]  ;;  %v2120_v31 = vld [vmem:[%s1897_s25 + $0xf8] sm:$0xff]  ;;  %p1751_p3 = pnand %p1750_p2, %p1746_p13 }
  0x24   : > { %v663_v2 = vadd.f32 %v631_v28, %v566_v54  ;;  %v355_v4 = vadd.f32 %v323_v56, %v258_v55  ;;  %3033 = vst [vmem:[#allocation10_spill] sm:$0xff] %v2020_v13  ;;  %v2023_v14 = vld [vmem:[%s1897_s25 + $0x61] sm:$0xff]  ;;  %v266_v26 = vmul.f32 %v1888_v5, %v2020_v13  ;;  %v2041_v28 = vld [vmem:[%s1897_s25 + $0x78] sm:$0xff]  ;;  %v307_v54 = vld [vmem:[%s1897_s25 + $0xc9] sm:$0xff] }
  0x25   : > { %3034 = vst [vmem:[#allocation11_spill] sm:$0xff] %v2023_v14  ;;  %v2026_v16 = vld [vmem:[%s1897_s25 + $0x62] sm:$0xff]  ;;  %v574_v17 = vadd.f32 %v542_v48, %v476_v60  ;;  %v331_v27 = vmul.f32 %v1890_v6, %v2023_v14  ;;  %v2048_v47 = vld [vmem:[%s1897_s25 + $0x79] sm:$0xff]  ;;  %v404_v55 = vld [vmem:[%s1897_s25 + $0xca] sm:$0xff]  ;;  %v907_v60 = vmul.f32 %v2031_v19, %v1923_v22 }
  0x26   : > { %3035 = vst [vmem:[#allocation12_spill] sm:$0xff] %v2026_v16  ;;  %v760_v33 = vadd.f32 %v728_v29, %v663_v2  ;;  %v452_v34 = vadd.f32 %v420_v57, %v355_v4  ;;  %v428_v40 = vmul.f32 %v1892_v7, %v2026_v16  ;;  %v526_v29 = vmul.f32 %v2041_v28, %v1899_v8  ;;  %v2062_v2 = vld [vmem:[%s1897_s25 + $0x7a] sm:$0xff]  ;;  %v2065_v4 = vld [vmem:[%s1897_s25 + $0x90] sm:$0xff] }
  0x27   : > { %v671_v48 = vadd.f32 %v639_v49, %v574_v17  ;;  %v363_v51 = vadd.f32 %v331_v27, %v266_v26  ;;  %v1004_v49 = vmul.f32 %v1908_v11, %v2034_v20  ;;  %v623_v27 = vmul.f32 %v2048_v47, %v1901_v9  ;;  %v2079_v14 = vld [vmem:[%s1897_s25 + $0x91] sm:$0xff]  ;;  %v2091_v13 = vld [vmem:[%s1897_s25 + $0xe1] sm:$0xff]  ;;  %3041 = vst [vmem:[#allocation18_spill] sm:$0xff] %v2120_v31  ;;  %v2123_v30 = vld [vmem:[%s1897_s25 + $0xf9] sm:$0xff] }
  0x28   : > { %v858_v56 = vadd.f32 %v826_v41, %v760_v33  ;;  %v550_v57 = vadd.f32 %v518_v12, %v452_v34  ;;  %v275_v16 = vmul.f32 %v1888_v5, %v242_v52  ;;  %v2071_v41 = vld [vmem:[%s1897_s25 + $0xe0] sm:$0xff]  ;;  %v720_v52 = vmul.f32 %v2062_v2, %v1903_v10  ;;  %3042 = vst [vmem:[#allocation19_spill] sm:$0xff] %v2123_v30 }
  0x29   : > { %v768_v17 = vadd.f32 %v736_v61, %v671_v48  ;;  %v460_v26 = vadd.f32 %v428_v40, %v363_v51  ;;  %v2076_v33 = vld [vmem:[%s2971_s2] ss:$0 sm:$0xff]  ;;  %v2082_v61 = vld [vmem:[%s1897_s25 + $0x92] sm:$0xff]  ;;  %v340_v40 = vmul.f32 %v1890_v6, %v307_v54  ;;  %v437_v48 = vmul.f32 %v1892_v7, %v404_v55 }
  0x2a   : > { %v955_v12 = vadd.f32 %v923_v42, %v858_v56  ;;  %v647_v34 = vadd.f32 %v615_v18, %v550_v57  ;;  %3036 = vst [vmem:[#allocation13_spill] sm:$0xff] %v2082_v61  ;;  %v818_v56 = vmul.f32 %v2065_v4, %v1913_v15  ;;  %v535_v54 = vmul.f32 %v2071_v41, %v1899_v8 }
  0x2b   : > { %v866_v51 = vadd.f32 %v834_v62, %v768_v17  ;;  %v558_v42 = vadd.f32 %v526_v29, %v460_v26  ;;  %v372_v32 = vadd.f32 %v340_v40, %v275_v16  ;;  %v2097_v62 = vld [vmem:[%s1897_s25 + $0x128] sm:$0xff]  ;;  %v915_v26 = vmul.f32 %v2079_v14, %v1923_v22 }
  0x2c   : > { %v1052_v18 = vadd.f32 %v1971_v43, %v955_v12  ;;  %v744_v57 = vadd.f32 %v712_v35, %v647_v34  ;;  %3037 = vst [vmem:[#allocation14_spill] sm:$0xff] %v2097_v62  ;;  %v2100_v29 = vld [vmem:[%s1897_s25 + $0x129] sm:$0xff]  ;;  %v1012_v43 = vmul.f32 %v1908_v11, %v2082_v61  ;;  %v924_v61 = vmul.f32 %v2123_v30, %v1923_v22  ;;  %v2166_v30 = vld [vmem:[%s1897_s25 + $0x159] sm:$0xff] }
  0x2d   : > { %3038 = vst [vmem:[#allocation15_spill] sm:$0xff] %v2100_v29  ;;  %v963_v55 = vadd.f32 %v931_v63, %v866_v51  ;;  %v655_v17 = vadd.f32 %v623_v27, %v558_v42  ;;  %v2107_v12 = vld [vmem:[%s1897_s25 + $0xe2] sm:$0xff]  ;;  %v2110_v16 = vld [vmem:[%s1897_s25 + $0x12a] sm:$0xff]  ;;  %v469_v40 = vadd.f32 %v437_v48, %v372_v32  ;;  %v632_v63 = vmul.f32 %v2091_v13, %v1901_v9 }
  0x2e   : > { %3039 = vst [vmem:[#allocation16_spill] sm:$0xff] %v2110_v16  ;;  %v1088_v35 = vadd.f32 %v2076_v33, %v1052_v18  ;;  %v842_v34 = vadd.f32 %v810_v50, %v744_v57  ;;  %v2116_v27 = vld [vmem:[%s1897_s25 + $0x140] sm:$0xff]  ;;  %v283_v18 = vmul.f32 %v1888_v5, %v2097_v62  ;;  %v348_v32 = vmul.f32 %v1890_v6, %v2100_v29 }
  0x2f   : > { %3040 = vst [vmem:[#allocation17_spill] sm:$0xff] %v2116_v27  ;;  %v1060_v51 = vadd.f32 %v2015_v3, %v963_v55  ;;  %v752_v42 = vadd.f32 %v720_v52, %v655_v17  ;;  %v567_v48 = vadd.f32 %v535_v54, %v469_v40  ;;  %v729_v3 = vmul.f32 %v2107_v12, %v1903_v10  ;;  %v2133_v52 = vld [vmem:[%s1897_s25 + $0xfa] sm:$0xff]  ;;  %v226_v54 = vld [vmem:[%s1897_s25 + $0x8] sm:$0xff] }
  0x30   : > { %1646 = vmatmul.msk.f32.vlgmr.msra.gmra.mxu2 %vm1112_vm0, %v1088_v35  ;;  %v939_v50 = vadd.f32 %v907_v60, %v842_v34  ;;  %3043 = vst [vmem:[#allocation20_spill] sm:$0xff] %v2133_v52  ;;  %v445_v57 = vmul.f32 %v1892_v7, %v2110_v16  ;;  %v2138_v55 = vld [vmem:[%s1897_s25 + $0x141] sm:$0xff]  ;;  %v380_v29 = vadd.f32 %v348_v32, %v283_v18  ;;  %v291_v35 = vld [vmem:[%s1897_s25 + $0x9] sm:$0xff]  ;;  %v2159_v32 = vld [vmem:[%s1897_s25 + $0x158] sm:$0xff] }
  0x31   : > { %3044 = vst [vmem:[#allocation21_spill] sm:$0xff] %v2138_v55  ;;  %v1096_v17 = vadd.f32 %v2076_v33, %v1060_v51  ;;  %v850_v62 = vadd.f32 %v818_v56, %v752_v42  ;;  %v543_v60 = vmul.f32 %v2116_v27, %v1899_v8  ;;  %v664_v40 = vadd.f32 %v632_v63, %v567_v48  ;;  %v2150_v51 = vld [vmem:[%s1897_s25 + $0x142] sm:$0xff]  ;;  %v388_v56 = vld [vmem:[%s1897_s25 + $0xa] sm:$0xff] }
  0x32   : > { %v1036_v34 = vadd.f32 %v1004_v49, %v939_v50  ;;  %v827_v16 = vmul.f32 %v2120_v31, %v1913_v15  ;;  %3045 = vst [vmem:[#allocation22_spill] sm:$0xff] %v2150_v51  ;;  %v1021_v18 = vmul.f32 %v1908_v11, %v2133_v52  ;;  %v477_v49 = vadd.f32 %v445_v57, %v380_v29  ;;  %v2162_v50 = vld [vmem:[%s1897_s25 + $0x20] sm:$0xff] }
  0x33   : > { %1654 = vmatmul.msk.f32.vlgmr.msra.gmra.mxu3 %vm1112_vm0, %v1096_v17  ;;  %v947_v42 = vadd.f32 %v915_v26, %v850_v62  ;;  %v640_v63 = vmul.f32 %v2138_v55, %v1901_v9  ;;  %3046 = vst [vmem:[#allocation23_spill] sm:$0xff] %v2159_v32  ;;  %v761_v27 = vadd.f32 %v729_v3, %v664_v40  ;;  %v2169_v62 = vld [vmem:[%s1897_s25 + $0x15a] sm:$0xff]  ;;  %v2180_v40 = vld [vmem:[%s1897_s25 + $0x68] sm:$0xff] }
  0x34   : > { %3047 = vst [vmem:[#allocation24_spill] sm:$0xff] %v2162_v50  ;;  %v1072_v48 = vadd.f32 %v2076_v33, %v1036_v34  ;;  %v259_v26 = vmul.f32 %v1888_v5, %v226_v54  ;;  %v324_v29 = vmul.f32 %v1890_v6, %v291_v35  ;;  %v575_v17 = vadd.f32 %v543_v60, %v477_v49  ;;  %v2177_v3 = vld [vmem:[%s1897_s25 + $0x21] sm:$0xff] }
  0x35   : > { %3048 = vst [vmem:[#allocation25_spill] sm:$0xff] %v2166_v30  ;;  %v1044_v57 = vadd.f32 %v1012_v43, %v947_v42  ;;  %v737_v52 = vmul.f32 %v2150_v51, %v1903_v10  ;;  %v421_v34 = vmul.f32 %v1892_v7, %v388_v56  ;;  %v859_v55 = vadd.f32 %v827_v16, %v761_v27  ;;  %v2188_v35 = vld [vmem:[%s1897_s25 + $0x22] sm:$0xff]  ;;  %v2194_v42 = vld [vmem:[%s1897_s25 + $0x6a] sm:$0xff]  ;;  %v2210_v31 = vld [vmem:[%s1897_s25 + $0x3a] sm:$0xff] }
  0x36   : > { %3049 = vst [vmem:[#allocation26_spill] sm:$0xff] %v2169_v62  ;;  %1630 = vmatmul.msk.f32.vlgmr.msra.gmra.mxu0 %vm1112_vm0, %v1072_v48  ;;  %v835_v54 = vmul.f32 %v2159_v32, %v1913_v15  ;;  %v356_v43 = vadd.f32 %v324_v29, %v259_v26  ;;  %v519_v60 = vmul.f32 %v2162_v50, %v1899_v8  ;;  %v2191_v56 = vld [vmem:[%s1897_s25 + $0x69] sm:$0xff]  ;;  %v2202_v48 = vld [vmem:[%s1897_s25 + $0x38] sm:$0xff] }
  0x37   : > { %3050 = vst [vmem:[#allocation27_spill] sm:$0xff] %v2177_v3  ;;  %v1080_v49 = vadd.f32 %v2076_v33, %v1044_v57  ;;  %v672_v51 = vadd.f32 %v640_v63, %v575_v17  ;;  %v932_v16 = vmul.f32 %v2166_v30, %v1923_v22  ;;  %v1029_v27 = vmul.f32 %v1908_v11, %v2169_v62  ;;  %v2205_v26 = vld [vmem:[%s1897_s25 + $0x39] sm:$0xff]  ;;  %v2236_v30 = vld [vmem:[%s1897_s25 + $0x82] sm:$0xff] }
  0x38   : > { %3051 = vst [vmem:[#allocation28_spill] sm:$0xff] %v2180_v40  ;;  %v956_v29 = vadd.f32 %v924_v61, %v859_v55  ;;  %v453_v50 = vadd.f32 %v421_v34, %v356_v43  ;;  %v616_v32 = vmul.f32 %v2177_v3, %v1901_v9  ;;  %v267_v63 = vmul.f32 %v1888_v5, %v2180_v40  ;;  %v2215_v57 = vld [vmem:[%s1897_s25 + $0x80] sm:$0xff] }
  0x39   : > { %3052 = vst [vmem:[#allocation29_spill] sm:$0xff] %v2188_v35  ;;  %1638 = vmatmul.msk.f32.vlgmr.msra.gmra.mxu1 %vm1112_vm0, %v1080_v49  ;;  %v769_v17 = vadd.f32 %v737_v52, %v672_v51  ;;  %v713_v61 = vmul.f32 %v2188_v35, %v1903_v10  ;;  %v332_v55 = vmul.f32 %v1890_v6, %v2191_v56  ;;  %v2225_v43 = vld [vmem:[%s1897_s25 + $0x81] sm:$0xff] }
  0x3a   : > { %3053 = vst [vmem:[#allocation30_spill] sm:$0xff] %v2191_v56  ;;  %v429_v34 = vmul.f32 %v1892_v7, %v2194_v42  ;;  %v1053_v40 = vadd.f32 %v1021_v18, %v956_v29  ;;  %v551_v62 = vadd.f32 %v519_v60, %v453_v50  ;;  %v811_v3 = vmul.f32 %v2202_v48, %v1913_v15  ;;  %v2242_v18 = vld [vmem:[%s1897_s25 + $0x99] sm:$0xff] }
  0x3b   : > { %3054 = vst [vmem:[#allocation31_spill] sm:$0xff] %v2194_v42  ;;  %v908_v49 = vmul.f32 %v2205_v26, %v1923_v22  ;;  %v867_v52 = vadd.f32 %v835_v54, %v769_v17  ;;  %v1005_v51 = vmul.f32 %v1908_v11, %v2210_v31  ;;  %v364_v35 = vadd.f32 %v332_v55, %v267_v63  ;;  %v2239_v42 = vld [vmem:[%s1897_s25 + $0x98] sm:$0xff] }
  0x3c   : > { %3055 = vst [vmem:[#allocation32_spill] sm:$0xff] %v2210_v31  ;;  %v527_v56 = vmul.f32 %v2215_v57, %v1899_v8  ;;  %v1089_v50 = vadd.f32 %v2076_v33, %v1053_v40  ;;  %v648_v60 = vadd.f32 %v616_v32, %v551_v62  ;;  %v624_v54 = vmul.f32 %v2225_v43, %v1901_v9 }
  0x3d   : > { %v373_v29 = vadd.f32 %v1990_v53, %v1963_v39  ;;  %v964_v63 = vadd.f32 %v932_v16, %v867_v52  ;;  %v461_v17 = vadd.f32 %v429_v34, %v364_v35  ;;  %v438_v55 = vmul.f32 %v1921_v21, %v1892_v7  ;;  %v2261_v16 = vld [vmem:[%s1897_s25 + $0x9a] sm:$0xff] }
  0x3e   : > { %v536_v31 = vmul.f32 %v1926_v23, %v1899_v8  ;;  %1647 = vmatmul.msk.f32.gmra.mxu2 %vm1112_vm0, %v1089_v50  ;;  %v745_v40 = vadd.f32 %v713_v61, %v648_v60  ;;  %v721_v32 = vmul.f32 %v2236_v30, %v1903_v10  ;;  %v819_v62 = vmul.f32 %v2239_v42, %v1913_v15  ;;  %v2268_v50 = vld [vmem:[%s1897_s25 + $0x108] sm:$0xff] }
  0x3f   : > { %v916_v39 = vmul.f32 %v2242_v18, %v1923_v22  ;;  %v1061_v53 = vadd.f32 %v1029_v27, %v964_v63  ;;  %v559_v35 = vadd.f32 %v527_v56, %v461_v17  ;;  %v470_v21 = vadd.f32 %v438_v55, %v373_v29  ;;  %v2271_v60 = vld [vmem:[%s1897_s25 + $0x109] sm:$0xff] }
  0x40   : > { %v633_v34 = vmul.f32 %v1929_v24, %v1901_v9  ;;  %v843_v52 = vadd.f32 %v811_v3, %v745_v40  ;;  %v730_v61 = vmul.f32 %v1932_v25, %v1903_v10  ;;  %v284_v23 = vmul.f32 %v1954_v36, %v1888_v5  ;;  %v2279_v17 = vld [vmem:[%s1897_s25 + $0x10a] sm:$0xff] }
  0x41   : > { %v349_v56 = vmul.f32 %v1957_v37, %v1890_v6  ;;  %v1097_v27 = vadd.f32 %v2076_v33, %v1061_v53  ;;  %v656_v29 = vadd.f32 %v624_v54, %v559_v35  ;;  %v568_v63 = vadd.f32 %v536_v31, %v470_v21 }
  0x42   : > { %v446_v3 = vmul.f32 %v1960_v38, %v1892_v7  ;;  %v940_v55 = vadd.f32 %v908_v49, %v843_v52  ;;  %v1013_v40 = vmul.f32 %v1908_v11, %v2261_v16  ;;  %v544_v36 = vmul.f32 %v1974_v44, %v1899_v8 }
  0x43   : > { %v381_v25 = vadd.f32 %v349_v56, %v284_v23  ;;  %1655 = vmatmul.msk.f32.gmra.mxu3 %vm1112_vm0, %v1097_v27  ;;  %v753_v37 = vadd.f32 %v721_v32, %v656_v29  ;;  %v665_v54 = vadd.f32 %v633_v34, %v568_v63  ;;  %v828_v31 = vmul.f32 %v2268_v50, %v1913_v15  ;;  %v2297_v56 = vld [vmem:[%s1897_s25 + $0x168] sm:$0xff] }
  0x44   : > { %v925_v38 = vmul.f32 %v2271_v60, %v1923_v22  ;;  %v1037_v53 = vadd.f32 %v1005_v51, %v940_v55  ;;  %v1022_v49 = vmul.f32 %v1908_v11, %v2279_v17  ;;  %v641_v23 = vmul.f32 %v1977_v45, %v1901_v9  ;;  %v2300_v32 = vld [vmem:[%s1897_s25 + $0x169] sm:$0xff] }
  0x45   : > { %v478_v35 = vadd.f32 %v446_v3, %v381_v25  ;;  %v851_v21 = vadd.f32 %v819_v62, %v753_v37  ;;  %v762_v52 = vadd.f32 %v730_v61, %v665_v54  ;;  %v260_v34 = vmul.f32 %v1996_v58, %v1888_v5 }
  0x46   : > { %v325_v51 = vmul.f32 %v1999_v59, %v1890_v6  ;;  %v1073_v27 = vadd.f32 %v2076_v33, %v1037_v53  ;;  %v738_v25 = vmul.f32 %v1980_v46, %v1903_v10  ;;  %v422_v62 = vmul.f32 %v2008_v0, %v1892_v7  ;;  %v2319_v53 = vld [vmem:[%s1897_s25 + $0x16a] sm:$0xff] }
  0x47   : > { %v576_v29 = vadd.f32 %v544_v36, %v478_v35  ;;  %v948_v61 = vadd.f32 %v916_v39, %v851_v21  ;;  %v860_v63 = vadd.f32 %v828_v31, %v762_v52  ;;  %v520_v58 = vmul.f32 %v2011_v1, %v1899_v8  ;;  %v2324_v35 = vld [vmem:[%s1897_s25 + $0x48] sm:$0xff] }
  0x48   : > { %v357_v3 = vadd.f32 %v325_v51, %v260_v34  ;;  %1631 = vmatmul.msk.f32.gmra.mxu0 %vm1112_vm0, %v1073_v27  ;;  %v836_v59 = vmul.f32 %v2297_v56, %v1913_v15  ;;  %v933_v36 = vmul.f32 %v2300_v32, %v1923_v22  ;;  %v617_v39 = vmul.f32 %v2031_v19, %v1901_v9 }
  0x49   : > { %v673_v55 = vadd.f32 %v641_v23, %v576_v29  ;;  %v1045_v37 = vadd.f32 %v1013_v40, %v948_v61  ;;  %v957_v54 = vadd.f32 %v925_v38, %v860_v63  ;;  %v268_v23 = vmul.f32 %v2041_v28, %v1888_v5  ;;  %v2338_v28 = vld [vmem:[%s1897_s25 + $0x49] sm:$0xff] }
  0x4a   : > { %v454_v0 = vadd.f32 %v422_v62, %v357_v3  ;;  %v333_v21 = vmul.f32 %v2048_v47, %v1890_v6  ;;  %v430_v40 = vmul.f32 %v2062_v2, %v1892_v7  ;;  %v714_v51 = vmul.f32 %v2034_v20, %v1903_v10  ;;  %v2347_v61 = vld [vmem:[%s1897_s25 + $0x4a] sm:$0xff] }
  0x4b   : > { %v770_v31 = vadd.f32 %v738_v25, %v673_v55  ;;  %v1081_v38 = vadd.f32 %v2076_v33, %v1045_v37  ;;  %v1054_v52 = vadd.f32 %v1022_v49, %v957_v54  ;;  %v1030_v29 = vmul.f32 %v1908_v11, %v2319_v53  ;;  %v2352_v55 = vld [vmem:[%s1897_s25 + $0xa8] sm:$0xff] }
  0x4c   : > { %v552_v34 = vadd.f32 %v520_v58, %v454_v0  ;;  %v365_v25 = vadd.f32 %v333_v21, %v268_v23  ;;  %v528_v47 = vmul.f32 %v2065_v4, %v1899_v8  ;;  %v812_v62 = vmul.f32 %v2324_v35, %v1913_v15  ;;  %3056 = vst [vmem:[#allocation33_spill] sm:$0xff] %v2352_v55 }
  0x4d   : > { %v868_v27 = vadd.f32 %v836_v59, %v770_v31  ;;  %1639 = vmatmul.msk.f32.gmra.mxu1 %vm1112_vm0, %v1081_v38  ;;  %v1090_v2 = vadd.f32 %v2076_v33, %v1054_v52  ;;  %v625_v58 = vmul.f32 %v2079_v14, %v1901_v9  ;;  %v277_v59 = vmul.f32 %v2071_v41, %v1888_v5  ;;  %v3057_v41 = vld [vmem:[#allocation13_spill] sm:$0xff]  ;;  %v2370_v52 = vld [vmem:[%s1897_s25 + $0xa9] sm:$0xff] }
  0x4e   : > { %v649_v49 = vadd.f32 %v617_v39, %v552_v34  ;;  %v462_v3 = vadd.f32 %v430_v40, %v365_v25  ;;  %v909_v54 = vmul.f32 %v2338_v28, %v1923_v22  ;;  %v439_v0 = vmul.f32 %v2107_v12, %v1892_v7  ;;  %3058 = vst [vmem:[#allocation13_spill] sm:$0xff] %v2370_v52  ;;  %v2373_v34 = vld [vmem:[%s1897_s25 + $0xaa] sm:$0xff] }
  0x4f   : > { %v965_v63 = vadd.f32 %v933_v36, %v868_v27  ;;  %1648 = vmatmul.msk.f32.gmra.mxu2 %vm1112_vm0, %v1090_v2  ;;  %v342_v36 = vmul.f32 %v2091_v13, %v1890_v6  ;;  %v1006_v31 = vmul.f32 %v1908_v11, %v2347_v61  ;;  %v722_v21 = vmul.f32 %v3057_v41, %v1903_v10  ;;  %v3060_v12 = vld [vmem:[#allocation18_spill] sm:$0xff]  ;;  %v3061_v25 = vld [vmem:[#allocation19_spill] sm:$0xff]  ;;  %v3062_v2 = vld [vmem:[#allocation17_spill] sm:$0xff] }
  0x50   : > { %v746_v37 = vadd.f32 %v714_v51, %v649_v49  ;;  %v560_v23 = vadd.f32 %v528_v47, %v462_v3  ;;  %v820_v38 = vmul.f32 %v2352_v55, %v1913_v15  ;;  %3059 = vst [vmem:[#allocation34_spill] sm:$0xff] %v2373_v34  ;;  %v537_v51 = vmul.f32 %v3060_v12, %v1899_v8  ;;  %v2383_v3 = vld [vmem:[%s1897_s25 + $0x110] sm:$0xff] }
  0x51   : > { %v1062_v39 = vadd.f32 %v1030_v29, %v965_v63  ;;  %v374_v13 = vadd.f32 %v342_v36, %v277_v59  ;;  %v634_v47 = vmul.f32 %v3061_v25, %v1901_v9  ;;  %v285_v49 = vmul.f32 %v3062_v2, %v1888_v5  ;;  %3063 = vst [vmem:[#allocation17_spill] sm:$0xff] %v2383_v3  ;;  %v3065_v36 = vld [vmem:[#allocation22_spill] sm:$0xff]  ;;  %v2397_v2 = vld [vmem:[%s1897_s25 + $0x111] sm:$0xff] }
  0x52   : > { %v844_v40 = vadd.f32 %v812_v62, %v746_v37  ;;  %v657_v29 = vadd.f32 %v625_v58, %v560_v23  ;;  %v3064_v37 = vld [vmem:[#allocation21_spill] sm:$0xff]  ;;  %v447_v12 = vmul.f32 %v3065_v36, %v1892_v7  ;;  %v3068_v36 = vld [vmem:[#allocation23_spill] sm:$0xff] }
  0x53   : > { %v1098_v27 = vadd.f32 %v2076_v33, %v1062_v39  ;;  %v471_v63 = vadd.f32 %v439_v0, %v374_v13  ;;  %v350_v59 = vmul.f32 %v3064_v37, %v1890_v6  ;;  %v917_v39 = vmul.f32 %v2370_v52, %v1923_v22  ;;  %v3066_v0 = vld [vmem:[#allocation20_spill] sm:$0xff]  ;;  %3067 = vst [vmem:[#allocation21_spill] sm:$0xff] %v2397_v2 }
  0x54   : > { %v941_v62 = vadd.f32 %v909_v54, %v844_v40  ;;  %v754_v58 = vadd.f32 %v722_v21, %v657_v29  ;;  %v1014_v54 = vmul.f32 %v1908_v11, %v2373_v34  ;;  %v731_v23 = vmul.f32 %v3066_v0, %v1903_v10  ;;  %v3069_v29 = vld [vmem:[#allocation25_spill] sm:$0xff]  ;;  %v3070_v34 = vld [vmem:[#allocation24_spill] sm:$0xff] }
  0x55   : > { %1656 = vmatmul.msk.f32.gmra.mxu3 %vm1112_vm0, %v1098_v27  ;;  %v569_v13 = vadd.f32 %v537_v51, %v471_v63  ;;  %v382_v37 = vadd.f32 %v350_v59, %v285_v49  ;;  %v545_v27 = vmul.f32 %v3068_v36, %v1899_v8  ;;  %v829_v21 = vmul.f32 %v2383_v3, %v1913_v15  ;;  %v2412_v63 = vld [vmem:[%s1897_s25 + $0x170] sm:$0xff] }
  0x56   : > { %v1038_v40 = vadd.f32 %v1006_v31, %v941_v62  ;;  %v852_v25 = vadd.f32 %v820_v38, %v754_v58  ;;  %v642_v52 = vmul.f32 %v3069_v29, %v1901_v9  ;;  %v261_v55 = vmul.f32 %v3070_v34, %v1888_v5  ;;  %v2409_v62 = vld [vmem:[%s1897_s25 + $0x112] sm:$0xff]  ;;  %v3073_v29 = vld [vmem:[#allocation26_spill] sm:$0xff]  ;;  %v3074_v34 = vld [vmem:[#allocation29_spill] sm:$0xff] }
  0x57   : > { %v666_v51 = vadd.f32 %v634_v47, %v569_v13  ;;  %3071 = vst [vmem:[#allocation22_spill] sm:$0xff] %v2409_v62  ;;  %v479_v49 = vadd.f32 %v447_v12, %v382_v37  ;;  %v3072_v38 = vld [vmem:[#allocation27_spill] sm:$0xff]  ;;  %v926_v36 = vmul.f32 %v2397_v2, %v1923_v22  ;;  %v739_v3 = vmul.f32 %v3073_v29, %v1903_v10 }
  0x58   : > { %v1074_v31 = vadd.f32 %v2076_v33, %v1038_v40  ;;  %v326_v59 = vmul.f32 %v3072_v38, %v1890_v6  ;;  %v949_v58 = vadd.f32 %v917_v39, %v852_v25  ;;  %v423_v47 = vmul.f32 %v3074_v34, %v1892_v7  ;;  %v2424_v13 = vld [vmem:[%s1897_s25 + $0x171] sm:$0xff] }
  0x59   : > { %v763_v12 = vadd.f32 %v731_v23, %v666_v51  ;;  %v577_v40 = vadd.f32 %v545_v27, %v479_v49  ;;  %v521_v25 = vmul.f32 %v2202_v48, %v1899_v8  ;;  %v1023_v38 = vmul.f32 %v1908_v11, %v2409_v62  ;;  %v2435_v23 = vld [vmem:[%s1897_s25 + $0x172] sm:$0xff] }
  0x5a   : > { %1632 = vmatmul.msk.f32.gmra.mxu0 %vm1112_vm0, %v1074_v31  ;;  %v358_v37 = vadd.f32 %v326_v59, %v261_v55  ;;  %v1046_v39 = vadd.f32 %v1014_v54, %v949_v58  ;;  %v837_v29 = vmul.f32 %v2412_v63, %v1913_v15  ;;  %v618_v34 = vmul.f32 %v2205_v26, %v1901_v9  ;;  %v2438_v55 = vld [vmem:[%s1897_s25 + $0x50] sm:$0xff] }
  0x5b   : > { %v861_v2 = vadd.f32 %v829_v21, %v763_v12  ;;  %v674_v31 = vadd.f32 %v642_v52, %v577_v40  ;;  %3075 = vst [vmem:[#allocation20_spill] sm:$0xff] %v2435_v23  ;;  %v269_v54 = vmul.f32 %v2215_v57, %v1888_v5  ;;  %v934_v49 = vmul.f32 %v2424_v13, %v1923_v22  ;;  %v3077_v12 = vld [vmem:[#allocation32_spill] sm:$0xff] }
  0x5c   : > { %v455_v27 = vadd.f32 %v423_v47, %v358_v37  ;;  %3076 = vst [vmem:[#allocation24_spill] sm:$0xff] %v2438_v55  ;;  %v1082_v51 = vadd.f32 %v2076_v33, %v1046_v39  ;;  %v334_v59 = vmul.f32 %v2225_v43, %v1890_v6  ;;  %v431_v52 = vmul.f32 %v2236_v30, %v1892_v7  ;;  %v2457_v43 = vld [vmem:[%s1897_s25 + $0x51] sm:$0xff] }
  0x5d   : > { %v958_v21 = vadd.f32 %v926_v36, %v861_v2  ;;  %v771_v58 = vadd.f32 %v739_v3, %v674_v31  ;;  %v715_v40 = vmul.f32 %v3077_v12, %v1903_v10  ;;  %v1031_v57 = vmul.f32 %v1908_v11, %v2435_v23  ;;  %v2464_v31 = vld [vmem:[%s1897_s25 + $0x52] sm:$0xff]  ;;  %v3078_v23 = vld [vmem:[#allocation5_spill] sm:$0xff] }
  0x5e   : > { %v553_v47 = vadd.f32 %v521_v25, %v455_v27  ;;  %1640 = vmatmul.msk.f32.gmra.mxu1 %vm1112_vm0, %v1082_v51  ;;  %v813_v37 = vmul.f32 %v2438_v55, %v1913_v15  ;;  %v366_v39 = vadd.f32 %v334_v59, %v269_v54  ;;  %v529_v30 = vmul.f32 %v2239_v42, %v1899_v8  ;;  %v2467_v51 = vld [vmem:[%s1897_s25 + $0xb0] sm:$0xff]  ;;  %v3079_v59 = vld [vmem:[#allocation6_spill] sm:$0xff] }
  0x5f   : > { %v1055_v2 = vadd.f32 %v1023_v38, %v958_v21  ;;  %v869_v3 = vadd.f32 %v837_v29, %v771_v58  ;;  %v626_v25 = vmul.f32 %v2242_v18, %v1901_v9  ;;  %v278_v55 = vmul.f32 %v3078_v23, %v1888_v5 }
  0x60   : > { %v650_v36 = vadd.f32 %v618_v34, %v553_v47  ;;  %v463_v27 = vadd.f32 %v431_v52, %v366_v39  ;;  %v343_v54 = vmul.f32 %v1929_v24, %v1890_v6  ;;  %v440_v38 = vmul.f32 %v3079_v59, %v1892_v7 }
  0x61   : > { %v1091_v29 = vadd.f32 %v2076_v33, %v1055_v2  ;;  %v966_v34 = vadd.f32 %v934_v49, %v869_v3  ;;  %v910_v52 = vmul.f32 %v2457_v43, %v1923_v22  ;;  %v723_v47 = vmul.f32 %v2261_v16, %v1903_v10  ;;  %v2491_v3 = vld [vmem:[%s1897_s25 + $0xb2] sm:$0xff] }
  0x62   : > { %v747_v21 = vadd.f32 %v715_v40, %v650_v36  ;;  %v561_v58 = vadd.f32 %v529_v30, %v463_v27  ;;  %v375_v23 = vadd.f32 %v343_v54, %v278_v55  ;;  %v538_v39 = vmul.f32 %v2268_v50, %v1899_v8  ;;  %v2488_v40 = vld [vmem:[%s1897_s25 + $0xb1] sm:$0xff] }
  0x63   : > { %1649 = vmatmul.msk.f32.gmra.mxu2 %vm1112_vm0, %v1091_v29  ;;  %v1063_v24 = vadd.f32 %v1031_v57, %v966_v34  ;;  %v1007_v2 = vmul.f32 %v1908_v11, %v2464_v31  ;;  %v821_v49 = vmul.f32 %v2467_v51, %v1913_v15  ;;  %v635_v55 = vmul.f32 %v2271_v60, %v1901_v9 }
  0x64   : > { %v845_v59 = vadd.f32 %v813_v37, %v747_v21  ;;  %v658_v30 = vadd.f32 %v626_v25, %v561_v58  ;;  %v472_v36 = vadd.f32 %v440_v38, %v375_v23  ;;  %v286_v27 = vmul.f32 %v1974_v44, %v1888_v5 }
  0x65   : > { %v1099_v57 = vadd.f32 %v2076_v33, %v1063_v24  ;;  %v351_v54 = vmul.f32 %v1977_v45, %v1890_v6  ;;  %v448_v29 = vmul.f32 %v1980_v46, %v1892_v7  ;;  %v918_v38 = vmul.f32 %v2488_v40, %v1923_v22 }
  0x66   : > { %v942_v37 = vadd.f32 %v910_v52, %v845_v59  ;;  %v755_v25 = vadd.f32 %v723_v47, %v658_v30  ;;  %v570_v34 = vadd.f32 %v538_v39, %v472_v36  ;;  %v732_v21 = vmul.f32 %v2279_v17, %v1903_v10  ;;  %v3080_v47 = vld [vmem:[#allocation7_spill] sm:$0xff]  ;;  %v2517_v36 = vld [vmem:[%s1897_s25 + $0x180] sm:$0xff] }
  0x67   : > { %1657 = vmatmul.msk.f32.gmra.mxu3 %vm1112_vm0, %v1099_v57  ;;  %v1015_v52 = vmul.f32 %v1908_v11, %v2491_v3  ;;  %v383_v58 = vadd.f32 %v351_v54, %v286_v27  ;;  %v546_v45 = vmul.f32 %v2297_v56, %v1899_v8  ;;  %v830_v24 = vmul.f32 %v1913_v15, %v3080_v47  ;;  %v3081_v57 = vld [vmem:[#allocation8_spill] sm:$0xff] }
  0x68   : > { %v1039_v44 = vadd.f32 %v1007_v2, %v942_v37  ;;  %v853_v46 = vadd.f32 %v821_v49, %v755_v25  ;;  %v667_v23 = vadd.f32 %v635_v55, %v570_v34  ;;  %v643_v39 = vmul.f32 %v2300_v32, %v1901_v9 }
  0x69   : > { %v480_v30 = vadd.f32 %v448_v29, %v383_v58  ;;  %v262_v2 = vmul.f32 %v2011_v1, %v1888_v5  ;;  %v327_v27 = vmul.f32 %v2031_v19, %v1890_v6  ;;  %v927_v37 = vmul.f32 %v1923_v22, %v3081_v57 }
  0x6a   : > { %v1075_v59 = vadd.f32 %v2076_v33, %v1039_v44  ;;  %v950_v49 = vadd.f32 %v918_v38, %v853_v46  ;;  %v764_v55 = vadd.f32 %v732_v21, %v667_v23  ;;  %v424_v54 = vmul.f32 %v2034_v20, %v1892_v7  ;;  %v3082_v38 = vld [vmem:[#allocation9_spill] sm:$0xff] }
  0x6b   : > { %v578_v29 = vadd.f32 %v546_v45, %v480_v30  ;;  %v740_v25 = vmul.f32 %v2319_v53, %v1903_v10  ;;  %v359_v34 = vadd.f32 %v327_v27, %v262_v2  ;;  %v522_v1 = vmul.f32 %v2324_v35, %v1899_v8  ;;  %v2537_v46 = vld [vmem:[%s1897_s25 + $0x181] sm:$0xff] }
  0x6c   : > { %1633 = vmatmul.msk.f32.gmra.mxu0 %vm1112_vm0, %v1075_v59  ;;  %v1047_v19 = vadd.f32 %v1015_v52, %v950_v49  ;;  %v862_v44 = vadd.f32 %v830_v24, %v764_v55  ;;  %v1024_v21 = vmul.f32 %v1908_v11, %v3082_v38  ;;  %v838_v58 = vmul.f32 %v2517_v36, %v1913_v15  ;;  %v2540_v23 = vld [vmem:[%s1897_s25 + $0x182] sm:$0xff] }
  0x6d   : > { %v675_v20 = vadd.f32 %v643_v39, %v578_v29  ;;  %v456_v45 = vadd.f32 %v424_v54, %v359_v34  ;;  %v619_v47 = vmul.f32 %v2338_v28, %v1901_v9  ;;  %v270_v59 = vmul.f32 %v2065_v4, %v1888_v5 }
  0x6e   : > { %v1083_v52 = vadd.f32 %v2076_v33, %v1047_v19  ;;  %v959_v24 = vadd.f32 %v927_v37, %v862_v44  ;;  %v335_v30 = vmul.f32 %v2079_v14, %v1890_v6  ;;  %v432_v2 = vmul.f32 %v3057_v41, %v1892_v7  ;;  %v3083_v14 = vld [vmem:[#allocation33_spill] sm:$0xff] }
  0x6f   : > { %v772_v39 = vadd.f32 %v740_v25, %v675_v20  ;;  %v935_v27 = vmul.f32 %v2537_v46, %v1923_v22  ;;  %v554_v49 = vadd.f32 %v522_v1, %v456_v45  ;;  %v716_v55 = vmul.f32 %v2347_v61, %v1903_v10  ;;  %v3084_v25 = vld [vmem:[#allocation10_spill] sm:$0xff]  ;;  %v3085_v1 = vld [vmem:[#allocation13_spill] sm:$0xff] }
  0x70   : > { %1641 = vmatmul.msk.f32.gmra.mxu1 %vm1112_vm0, %v1083_v52  ;;  %v1056_v4 = vadd.f32 %v1024_v21, %v959_v24  ;;  %v1032_v57 = vmul.f32 %v1908_v11, %v2540_v23  ;;  %v367_v37 = vadd.f32 %v335_v30, %v270_v59  ;;  %v530_v54 = vmul.f32 %v3083_v14, %v1899_v8  ;;  %v2566_v20 = vld [vmem:[%s1897_s25 + $0xc0] sm:$0xff]  ;;  %v3086_v21 = vld [vmem:[#allocation18_spill] sm:$0xff]  ;;  %v3087_v59 = vld [vmem:[#allocation19_spill] sm:$0xff] }
  0x71   : > { %v870_v41 = vadd.f32 %v838_v58, %v772_v39  ;;  %v651_v29 = vadd.f32 %v619_v47, %v554_v49  ;;  %v814_v34 = vmul.f32 %v1913_v15, %v3084_v25  ;;  %v627_v19 = vmul.f32 %v3085_v1, %v1901_v9  ;;  %v3088_v24 = vld [vmem:[#allocation11_spill] sm:$0xff]  ;;  %v3089_v49 = vld [vmem:[#allocation34_spill] sm:$0xff]  ;;  %v3090_v25 = vld [vmem:[#allocation17_spill] sm:$0xff] }
  0x72   : > { %v1092_v44 = vadd.f32 %v2076_v33, %v1056_v4  ;;  %v464_v38 = vadd.f32 %v432_v2, %v367_v37  ;;  %v279_v45 = vmul.f32 %v3086_v21, %v1888_v5  ;;  %v344_v52 = vmul.f32 %v3087_v59, %v1890_v6 }
  0x73   : > { %v967_v58 = vadd.f32 %v935_v27, %v870_v41  ;;  %v748_v47 = vadd.f32 %v716_v55, %v651_v29  ;;  %v911_v30 = vmul.f32 %v1923_v22, %v3088_v24  ;;  %v441_v39 = vmul.f32 %v3066_v0, %v1892_v7  ;;  %v3091_v27 = vld [vmem:[#allocation12_spill] sm:$0xff]  ;;  %v2586_v29 = vld [vmem:[%s1897_s25 + $0xc1] sm:$0xff] }
  0x74   : > { %1650 = vmatmul.msk.f32.gmra.mxu2 %vm1112_vm0, %v1092_v44  ;;  %v562_v2 = vadd.f32 %v530_v54, %v464_v38  ;;  %v724_v4 = vmul.f32 %v3089_v49, %v1903_v10  ;;  %v376_v37 = vadd.f32 %v344_v52, %v279_v45  ;;  %v539_v21 = vmul.f32 %v3090_v25, %v1899_v8  ;;  %v2589_v44 = vld [vmem:[%s1897_s25 + $0xc2] sm:$0xff]  ;;  %v3093_v52 = vld [vmem:[#allocation23_spill] sm:$0xff] }
  0x75   : > { %v1064_v59 = vadd.f32 %v1032_v57, %v967_v58  ;;  %v846_v1 = vadd.f32 %v814_v34, %v748_v47  ;;  %v1008_v55 = vmul.f32 %v1908_v11, %v3091_v27  ;;  %v822_v41 = vmul.f32 %v2566_v20, %v1913_v15  ;;  %v3092_v38 = vld [vmem:[#allocation21_spill] sm:$0xff]  ;;  %v3095_v27 = vld [vmem:[#allocation26_spill] sm:$0xff] }
  0x76   : > { %v659_v0 = vadd.f32 %v627_v19, %v562_v2  ;;  %v473_v54 = vadd.f32 %v441_v39, %v376_v37  ;;  %v636_v45 = vmul.f32 %v3092_v38, %v1901_v9  ;;  %v287_v24 = vmul.f32 %v3093_v52, %v1888_v5  ;;  %v3094_v58 = vld [vmem:[#allocation25_spill] sm:$0xff] }
  0x77   : > { %v1100_v57 = vadd.f32 %v2076_v33, %v1064_v59  ;;  %v943_v34 = vadd.f32 %v911_v30, %v846_v1  ;;  %v352_v47 = vmul.f32 %v3094_v58, %v1890_v6  ;;  %v449_v25 = vmul.f32 %v3095_v27, %v1892_v7 }
  0x78   : > { %v756_v19 = vadd.f32 %v724_v4, %v659_v0  ;;  %v919_v39 = vmul.f32 %v2586_v29, %v1923_v22  ;;  %v571_v2 = vadd.f32 %v539_v21, %v473_v54  ;;  %v733_v37 = vmul.f32 %v2409_v62, %v1903_v10  ;;  %v3096_v4 = vld [vmem:[#allocation14_spill] sm:$0xff] }
  0x79   : > { %1658 = vmatmul.msk.f32.gmra.mxu3 %vm1112_vm0, %v1100_v57  ;;  %v1040_v52 = vadd.f32 %v1008_v55, %v943_v34  ;;  %v1016_v1 = vmul.f32 %v1908_v11, %v2589_v44  ;;  %v384_v30 = vadd.f32 %v352_v47, %v287_v24  ;;  %v547_v59 = vmul.f32 %v2412_v63, %v1899_v8  ;;  %v2615_v57 = vld [vmem:[%s1897_s25 + $0x188] sm:$0xff]  ;;  %v3097_v24 = vld [vmem:[#allocation15_spill] sm:$0xff] }
  0x7a   : > { %v854_v58 = vadd.f32 %v822_v41, %v756_v19  ;;  %v668_v27 = vadd.f32 %v636_v45, %v571_v2  ;;  %v831_v0 = vmul.f32 %v1913_v15, %v3096_v4  ;;  %v644_v21 = vmul.f32 %v2424_v13, %v1901_v9  ;;  %v3098_v19 = vld [vmem:[#allocation20_spill] sm:$0xff]  ;;  %v2643_v4 = vld [vmem:[%s1897_s25 + $0x18a] sm:$0xff] }
  0x7b   : > { %v1076_v54 = vadd.f32 %v2076_v33, %v1040_v52  ;;  %v481_v62 = vadd.f32 %v449_v25, %v384_v30  ;;  %v263_v11 = vmul.f32 %v2202_v48, %v1888_v5  ;;  %v328_v55 = vmul.f32 %v2205_v26, %v1890_v6  ;;  %v3099_v52 = vld [vmem:[#allocation24_spill] sm:$0xff] }
  0x7c   : > { %v951_v41 = vadd.f32 %v919_v39, %v854_v58  ;;  %v765_v45 = vadd.f32 %v733_v37, %v668_v27  ;;  %v928_v34 = vmul.f32 %v1923_v22, %v3097_v24  ;;  %v425_v47 = vmul.f32 %v3077_v12, %v1892_v7  ;;  %v2633_v37 = vld [vmem:[%s2970_s1 + $0x8] ss:$0 sm:$0xff]  ;;  %v3100_v58 = vld [vmem:[#allocation16_spill] sm:$0xff] }
  0x7d   : > { %1634 = vmatmul.msk.f32.gmra.mxu0 %vm1112_vm0, %v1076_v54  ;;  %v579_v25 = vadd.f32 %v547_v59, %v481_v62  ;;  %v741_v2 = vmul.f32 %v3098_v19, %v1903_v10  ;;  %v360_v48 = vadd.f32 %v328_v55, %v263_v11  ;;  %v523_v30 = vmul.f32 %v3099_v52, %v1899_v8  ;;  %v2640_v59 = vld [vmem:[%s1897_s25 + $0x189] sm:$0xff] }
  0x7e   : > { %v1048_v26 = vadd.f32 %v1016_v1, %v951_v41  ;;  %v863_v39 = vadd.f32 %v831_v0, %v765_v45  ;;  %v1025_v12 = vmul.f32 %v2633_v37, %v3100_v58  ;;  %v839_v62 = vmul.f32 %v2615_v57, %v1913_v15  ;;  %v1460_v58 = vld [vmem:[%s1897_s25 + $0x120] sm:$0xff] }
  0x7f   : > { %v676_v27 = vadd.f32 %v644_v21, %v579_v25  ;;  %v457_v54 = vadd.f32 %v425_v47, %v360_v48  ;;  %v620_v1 = vmul.f32 %v2457_v43, %v1901_v9  ;;  %v271_v0 = vmul.f32 %v2239_v42, %v1888_v5 }
  0x80   : > { %v1084_v11 = vadd.f32 %v2076_v33, %v1048_v26  ;;  %v960_v55 = vadd.f32 %v928_v34, %v863_v39  ;;  %v336_v41 = vmul.f32 %v2242_v18, %v1890_v6  ;;  %v433_v45 = vmul.f32 %v2261_v16, %v1892_v7  ;;  %v3101_v26 = vld [vmem:[#allocation28_spill] sm:$0xff] }
  0x81   : > { %v773_v21 = vadd.f32 %v741_v2, %v676_v27  ;;  %v936_v24 = vmul.f32 %v2640_v59, %v1923_v22  ;;  %v555_v47 = vadd.f32 %v523_v30, %v457_v54  ;;  %v717_v25 = vmul.f32 %v2464_v31, %v1903_v10  ;;  %v2670_v54 = vld [vmem:[%s1897_s25 + $0xc8] sm:$0xff] }
  0x82   : > { %1642 = vmatmul.msk.f32.gmra.mxu1 %vm1112_vm0, %v1084_v11  ;;  %v1057_v42 = vadd.f32 %v1025_v12, %v960_v55  ;;  %v1033_v34 = vmul.f32 %v2633_v37, %v2643_v4  ;;  %v368_v48 = vadd.f32 %v336_v41, %v271_v0  ;;  %v531_v18 = vmul.f32 %v2467_v51, %v1899_v8  ;;  %v3102_v55 = vld [vmem:[#allocation30_spill] sm:$0xff] }
  0x83   : > { %v871_v16 = vadd.f32 %v839_v62, %v773_v21  ;;  %v652_v2 = vadd.f32 %v620_v1, %v555_v47  ;;  %v815_v39 = vmul.f32 %v1913_v15, %v3101_v26  ;;  %v628_v30 = vmul.f32 %v2488_v40, %v1901_v9  ;;  %v1524_v26 = vld [vmem:[%s1897_s25 + $0x122] sm:$0xff] }
  0x84   : > { %v1093_v27 = vadd.f32 %v2076_v33, %v1057_v42  ;;  %v465_v12 = vadd.f32 %v433_v45, %v368_v48  ;;  %v280_v0 = vmul.f32 %v2268_v50, %v1888_v5  ;;  %v345_v62 = vmul.f32 %v2271_v60, %v1890_v6  ;;  %v1492_v45 = vld [vmem:[%s1897_s25 + $0x121] sm:$0xff]  ;;  %v3103_v48 = vld [vmem:[#allocation31_spill] sm:$0xff] }
  0x85   : > { %v968_v1 = vadd.f32 %v936_v24, %v871_v16  ;;  %v749_v11 = vadd.f32 %v717_v25, %v652_v2  ;;  %v912_v41 = vmul.f32 %v1923_v22, %v3102_v55  ;;  %v442_v21 = vmul.f32 %v2279_v17, %v1892_v7  ;;  %v2690_v17 = vld [vmem:[%s1897_s25 + $0xc9] sm:$0xff] }
  0x86   : > { %1651 = vmatmul.msk.f32.gmra.mxu2 %vm1112_vm0, %v1093_v27  ;;  %v563_v47 = vadd.f32 %v531_v18, %v465_v12  ;;  %v725_v50 = vmul.f32 %v2491_v3, %v1903_v10  ;;  %v377_v42 = vadd.f32 %v345_v62, %v280_v0  ;;  %v540_v60 = vmul.f32 %v1460_v58, %v1899_v8  ;;  %v2694_v18 = vld [vmem:[%s1897_s25 + $0xca] sm:$0xff]  ;;  %v1556_v62 = vld [vmem:[%s1897_s25 + $0x138] sm:$0xff] }
  0x87   : > { %v1065_v24 = vadd.f32 %v1033_v34, %v968_v1  ;;  %v847_v25 = vadd.f32 %v815_v39, %v749_v11  ;;  %v1009_v16 = vmul.f32 %v2633_v37, %v3103_v48  ;;  %v823_v2 = vmul.f32 %v2670_v54, %v1913_v15 }
  0x88   : > { %v660_v27 = vadd.f32 %v628_v30, %v563_v47  ;;  %v474_v12 = vadd.f32 %v442_v21, %v377_v42  ;;  %v637_v0 = vmul.f32 %v1492_v45, %v1901_v9  ;;  %v288_v34 = vmul.f32 %v2297_v56, %v1888_v5 }
  0x89   : > { %v1101_v39 = vadd.f32 %v2076_v33, %v1065_v24  ;;  %v944_v58 = vadd.f32 %v912_v41, %v847_v25  ;;  %v353_v1 = vmul.f32 %v2300_v32, %v1890_v6  ;;  %v450_v30 = vmul.f32 %v2319_v53, %v1892_v7  ;;  %v1588_v32 = vld [vmem:[%s1897_s25 + $0x139] sm:$0xff] }
  0x8a   : > { %v757_v11 = vadd.f32 %v725_v50, %v660_v27  ;;  %v920_v55 = vmul.f32 %v2690_v17, %v1923_v22  ;;  %v572_v21 = vadd.f32 %v540_v60, %v474_v12  ;;  %v734_v56 = vmul.f32 %v1524_v26, %v1903_v10  ;;  %v1444_v25 = vld [vmem:[%s1897_s25 + $0x60] sm:$0xff]  ;;  %v1564_v27 = vld [vmem:[%s1897_s25 + $0x198] sm:$0xff] }
  0x8b   : > { %1659 = vmatmul.msk.f32.gmra.mxu3 %vm1112_vm0, %v1101_v39  ;;  %v1041_v41 = vadd.f32 %v1009_v16, %v944_v58  ;;  %v1017_v45 = vmul.f32 %v2633_v37, %v2694_v18  ;;  %v385_v47 = vadd.f32 %v353_v1, %v288_v34  ;;  %v548_v53 = vmul.f32 %v2517_v36, %v1899_v8  ;;  %v1620_v16 = vld [vmem:[%s1897_s25 + $0x13a] sm:$0xff] }
  0x8c   : > { %v855_v50 = vadd.f32 %v823_v2, %v757_v11  ;;  %v669_v42 = vadd.f32 %v637_v0, %v572_v21  ;;  %v832_v24 = vmul.f32 %v1556_v62, %v1913_v15  ;;  %v645_v60 = vmul.f32 %v2537_v46, %v1901_v9  ;;  %v1508_v21 = vld [vmem:[%s1897_s25 + $0x62] sm:$0xff] }
  0x8d   : > { %v1077_v48 = vadd.f32 %v2076_v33, %v1041_v41  ;;  %v482_v26 = vadd.f32 %v450_v30, %v385_v47  ;;  %v264_v12 = vmul.f32 %v2324_v35, %v1888_v5  ;;  %v329_v36 = vmul.f32 %v2338_v28, %v1890_v6  ;;  %v1476_v33 = vld [vmem:[%s1897_s25 + $0x61] sm:$0xff] }
  0x8e   : > { %v952_v2 = vadd.f32 %v920_v55, %v855_v50  ;;  %v766_v0 = vadd.f32 %v734_v56, %v669_v42  ;;  %v929_v34 = vmul.f32 %v1588_v32, %v1923_v22  ;;  %v426_v46 = vmul.f32 %v2347_v61, %v1892_v7  ;;  %v1596_v55 = vld [vmem:[%s1897_s25 + $0x199] sm:$0xff] }
  0x8f   : > { %1635 = vmatmul.msk.f32.gmra.mxu0 %vm1112_vm0, %v1077_v48  ;;  %v580_v39 = vadd.f32 %v548_v53, %v482_v26  ;;  %v742_v35 = vmul.f32 %v2540_v23, %v1903_v10  ;;  %v361_v58 = vadd.f32 %v329_v36, %v264_v12  ;;  %v524_v28 = vmul.f32 %v1444_v25, %v1899_v8  ;;  %v1628_v56 = vld [vmem:[%s1897_s25 + $0x19a] sm:$0xff] }
  0x90   : > { %v1049_v62 = vadd.f32 %v1017_v45, %v952_v2  ;;  %v864_v1 = vadd.f32 %v832_v24, %v766_v0  ;;  %v1026_v30 = vmul.f32 %v2633_v37, %v1620_v16  ;;  %v840_v11 = vmul.f32 %v1564_v27, %v1913_v15  ;;  %v2744_v45 = vld [vmem:[%s2971_s2] ss:$0 sm:$0xff]  ;;  %v1540_v50 = vld [vmem:[%s1897_s25 + $0x78] sm:$0xff] }
  0x91   : > { %v677_v61 = vadd.f32 %v645_v60, %v580_v39  ;;  %v458_v41 = vadd.f32 %v426_v46, %v361_v58  ;;  %v621_v32 = vmul.f32 %v1476_v33, %v1901_v9  ;;  %v272_v23 = vmul.f32 %v3083_v14, %v1888_v5  ;;  %v3104_v42 = vld [vmem:[#allocation13_spill] sm:$0xff]  ;;  %v1461_v33 = vld [vmem:[%s1897_s25 + $0x128] sm:$0xff] }
  0x92   : > { %v1085_v47 = vadd.f32 %v2744_v45, %v1049_v62  ;;  %v961_v53 = vadd.f32 %v929_v34, %v864_v1  ;;  %v337_v24 = vmul.f32 %v3104_v42, %v1890_v6  ;;  %v434_v60 = vmul.f32 %v3089_v49, %v1892_v7  ;;  %v1572_v12 = vld [vmem:[%s1897_s25 + $0x79] sm:$0xff] }
  0x93   : > { %v774_v25 = vadd.f32 %v742_v35, %v677_v61  ;;  %v937_v14 = vmul.f32 %v1596_v55, %v1923_v22  ;;  %v556_v48 = vadd.f32 %v524_v28, %v458_v41  ;;  %v718_v16 = vmul.f32 %v1508_v21, %v1903_v10  ;;  %v1604_v35 = vld [vmem:[%s1897_s25 + $0x7a] sm:$0xff]  ;;  %v1493_v61 = vld [vmem:[%s1897_s25 + $0x129] sm:$0xff] }
  0x94   : > { %1643 = vmatmul.msk.f32.gmra.mxu1 %vm1112_vm0, %v1085_v47  ;;  %v1058_v26 = vadd.f32 %v1026_v30, %v961_v53  ;;  %v1034_v27 = vmul.f32 %v2633_v37, %v1628_v56  ;;  %v369_v36 = vadd.f32 %v337_v24, %v272_v23  ;;  %v532_v2 = vmul.f32 %v2566_v20, %v1899_v8  ;;  %v1548_v28 = vld [vmem:[%s1897_s25 + $0xd8] sm:$0xff]  ;;  %v3105_v62 = vld [vmem:[#allocation17_spill] sm:$0xff]  ;;  %v1525_v24 = vld [vmem:[%s1897_s25 + $0x12a] sm:$0xff] }
  0x95   : > { %v872_v49 = vadd.f32 %v840_v11, %v774_v25  ;;  %v653_v0 = vadd.f32 %v621_v32, %v556_v48  ;;  %v816_v34 = vmul.f32 %v1540_v50, %v1913_v15  ;;  %v629_v46 = vmul.f32 %v2586_v29, %v1901_v9  ;;  %v3106_v29 = vld [vmem:[#allocation22_spill] sm:$0xff]  ;;  %v1580_v42 = vld [vmem:[%s1897_s25 + $0xd9] sm:$0xff] }
  0x96   : > { %v1094_v39 = vadd.f32 %v2744_v45, %v1058_v26  ;;  %v466_v58 = vadd.f32 %v434_v60, %v369_v36  ;;  %v281_v1 = vmul.f32 %v3105_v62, %v1888_v5  ;;  %v346_v20 = vmul.f32 %v3092_v38, %v1890_v6  ;;  %v1612_v25 = vld [vmem:[%s1897_s25 + $0xda] sm:$0xff]  ;;  %v1445_v62 = vld [vmem:[%s1897_s25 + $0x68] sm:$0xff] }
  0x97   : > { %v969_v30 = vadd.f32 %v937_v14, %v872_v49  ;;  %v750_v11 = vadd.f32 %v718_v16, %v653_v0  ;;  %v913_v55 = vmul.f32 %v1572_v12, %v1923_v22  ;;  %v443_v21 = vmul.f32 %v3106_v29, %v1892_v7 }
  0x98   : > { %1652 = vmatmul.msk.f32.gmra.mxu2 %vm1112_vm0, %v1094_v39  ;;  %v564_v56 = vadd.f32 %v532_v2, %v466_v58  ;;  %v726_v41 = vmul.f32 %v2589_v44, %v1903_v10  ;;  %v378_v32 = vadd.f32 %v346_v20, %v281_v1  ;;  %v541_v38 = vmul.f32 %v1461_v33, %v1899_v8  ;;  %v1589_v33 = vld [vmem:[%s1897_s25 + $0x141] sm:$0xff] }
  0x99   : > { %v1066_v23 = vadd.f32 %v1034_v27, %v969_v30  ;;  %v848_v47 = vadd.f32 %v816_v34, %v750_v11  ;;  %v1010_v53 = vmul.f32 %v2633_v37, %v1604_v35  ;;  %v824_v50 = vmul.f32 %v1548_v28, %v1913_v15  ;;  %v1557_v27 = vld [vmem:[%s1897_s25 + $0x140] sm:$0xff] }
  0x9a   : > { %v661_v60 = vadd.f32 %v629_v46, %v564_v56  ;;  %v475_v14 = vadd.f32 %v443_v21, %v378_v32  ;;  %v638_v48 = vmul.f32 %v1493_v61, %v1901_v9  ;;  %v289_v44 = vmul.f32 %v2412_v63, %v1888_v5  ;;  %v1621_v20 = vld [vmem:[%s1897_s25 + $0x142] sm:$0xff] }
  0x9b   : > { %v1102_v16 = vadd.f32 %v2744_v45, %v1066_v23  ;;  %v945_v26 = vadd.f32 %v913_v55, %v848_v47  ;;  %v354_v12 = vmul.f32 %v2424_v13, %v1890_v6  ;;  %v451_v36 = vmul.f32 %v3098_v19, %v1892_v7  ;;  %v1565_v11 = vld [vmem:[%s1897_s25 + $0x1a0] sm:$0xff]  ;;  %v1477_v56 = vld [vmem:[%s1897_s25 + $0x69] sm:$0xff] }
  0x9c   : > { %v758_v2 = vadd.f32 %v726_v41, %v661_v60  ;;  %v921_v49 = vmul.f32 %v1580_v42, %v1923_v22  ;;  %v573_v0 = vadd.f32 %v541_v38, %v475_v14  ;;  %v735_v34 = vmul.f32 %v1525_v24, %v1903_v10 }
  0x9d   : > { %1660 = vmatmul.msk.f32.gmra.mxu3 %vm1112_vm0, %v1102_v16  ;;  %v1042_v63 = vadd.f32 %v1010_v53, %v945_v26  ;;  %v1018_v46 = vmul.f32 %v2633_v37, %v1612_v25  ;;  %v386_v39 = vadd.f32 %v354_v12, %v289_v44  ;;  %v549_v13 = vmul.f32 %v2615_v57, %v1899_v8  ;;  %v1541_v44 = vld [vmem:[%s1897_s25 + $0x80] sm:$0xff] }
  0x9e   : > { %v856_v19 = vadd.f32 %v824_v50, %v758_v2  ;;  %v670_v35 = vadd.f32 %v638_v48, %v573_v0  ;;  %v833_v58 = vmul.f32 %v1557_v27, %v1913_v15  ;;  %v646_v28 = vmul.f32 %v2640_v59, %v1901_v9  ;;  %v1597_v50 = vld [vmem:[%s1897_s25 + $0x1a1] sm:$0xff] }
  0x9f   : > { %v1078_v1 = vadd.f32 %v2744_v45, %v1042_v63  ;;  %v483_v30 = vadd.f32 %v451_v36, %v386_v39  ;;  %v265_v55 = vmul.f32 %v3099_v52, %v1888_v5  ;;  %v330_v57 = vmul.f32 %v2457_v43, %v1890_v6  ;;  %v1629_v48 = vld [vmem:[%s1897_s25 + $0x1a2] sm:$0xff] }
  0xa0   : > { %v953_v29 = vadd.f32 %v921_v49, %v856_v19  ;;  %v767_v21 = vadd.f32 %v735_v34, %v670_v35  ;;  %v930_v61 = vmul.f32 %v1589_v33, %v1923_v22  ;;  %v427_v59 = vmul.f32 %v2464_v31, %v1892_v7  ;;  %v1509_v31 = vld [vmem:[%s1897_s25 + $0x6a] sm:$0xff]  ;;  %v1605_v63 = vld [vmem:[%s1897_s25 + $0x82] sm:$0xff] }
  0xa1   : > { %1636 = vmatmul.msk.f32.gmra.mxu0 %vm1112_vm0, %v1078_v1  ;;  %v581_v41 = vadd.f32 %v549_v13, %v483_v30  ;;  %v743_v52 = vmul.f32 %v2643_v4, %v1903_v10  ;;  %v362_v32 = vadd.f32 %v330_v57, %v265_v55  ;;  %v525_v43 = vmul.f32 %v1445_v62, %v1899_v8  ;;  %v1581_v1 = vld [vmem:[%s1897_s25 + $0xe1] sm:$0xff] }
  0xa2   : > { %v1050_v38 = vadd.f32 %v1018_v46, %v953_v29  ;;  %v865_v23 = vadd.f32 %v833_v58, %v767_v21  ;;  %v1027_v47 = vmul.f32 %v2633_v37, %v1621_v20  ;;  %v841_v53 = vmul.f32 %v1565_v11, %v1913_v15  ;;  %v1613_v11 = vld [vmem:[%s1897_s25 + $0xe2] sm:$0xff] }
  0xa3   : > { %v678_v42 = vadd.f32 %v646_v28, %v581_v41  ;;  %v459_v24 = vadd.f32 %v427_v59, %v362_v32  ;;  %v622_v60 = vmul.f32 %v1477_v56, %v1901_v9  ;;  %v273_v4 = vmul.f32 %v2467_v51, %v1888_v5  ;;  %v1573_v51 = vld [vmem:[%s1897_s25 + $0x81] sm:$0xff] }
  0xa4   : > { %v1086_v25 = vadd.f32 %v2744_v45, %v1050_v38  ;;  %v962_v14 = vadd.f32 %v930_v61, %v865_v23  ;;  %v338_v16 = vmul.f32 %v2488_v40, %v1890_v6  ;;  %v435_v26 = vmul.f32 %v2491_v3, %v1892_v7 }
  0xa5   : > { %v775_v27 = vadd.f32 %v743_v52, %v678_v42  ;;  %v938_v12 = vmul.f32 %v1597_v50, %v1923_v22  ;;  %v557_v36 = vadd.f32 %v525_v43, %v459_v24  ;;  %v719_v2 = vmul.f32 %v1509_v31, %v1903_v10 }
  0xa6   : > { %1644 = vmatmul.msk.f32.gmra.mxu1 %vm1112_vm0, %v1086_v25  ;;  %v1059_v5 = vadd.f32 %v1027_v47, %v962_v14  ;;  %v370_v49 = vadd.f32 %v338_v16, %v273_v4  ;;  %v533_v0 = vmul.f32 %v2670_v54, %v1899_v8  ;;  %v1035_v40 = vmul.f32 %v2633_v37, %v1629_v48  ;;  %v1549_v54 = vld [vmem:[%s1897_s25 + $0xe0] sm:$0xff] }
  0xa7   : > { %v873_v6 = vadd.f32 %v841_v53, %v775_v27  ;;  %v654_v34 = vadd.f32 %v622_v60, %v557_v36  ;;  %v817_v7 = vmul.f32 %v1541_v44, %v1913_v15  ;;  %v630_v33 = vmul.f32 %v2690_v17, %v1901_v9 }
  0xa8   : > { %v1095_v3 = vadd.f32 %v2744_v45, %v1059_v5  ;;  %v467_v46 = vadd.f32 %v435_v26, %v370_v49  ;;  %v914_v8 = vmul.f32 %v1573_v51, %v1923_v22  ;;  %v727_v35 = vmul.f32 %v2694_v18, %v1903_v10 }
  0xa9   : > { %v970_v39 = vadd.f32 %v938_v12, %v873_v6  ;;  %v751_v13 = vadd.f32 %v719_v2, %v654_v34  ;;  %v1011_v62 = vmul.f32 %v2633_v37, %v1605_v63  ;;  %v825_v17 = vmul.f32 %v1549_v54, %v1913_v15  ;;  %v2863_v15 = vld [vmem:[%s2973_s4] ss:$0 sm:$0xff] }
  0xaa   : > { %1653 = vmatmul.msk.f32.gmra.mxu2 %vm1112_vm0, %v1095_v3  ;;  %v565_v19 = vadd.f32 %v533_v0, %v467_v46  ;;  %v922_v57 = vmul.f32 %v1581_v1, %v1923_v22  ;;  %v1019_v29 = vmul.f32 %v2633_v37, %v1613_v11 }
  0xab   : > { %v1067_v58 = vadd.f32 %v1035_v40, %v970_v39  ;;  %v849_v28 = vadd.f32 %v817_v7, %v751_v13 }
  0xac   : > { %v662_v9 = vadd.f32 %v630_v33, %v565_v19 }
  0xad   : > { %v1103_v20 = vadd.f32 %v2744_v45, %v1067_v58  ;;  %v946_v30 = vadd.f32 %v914_v8, %v849_v28 }
  0xae   : > { %v759_v55 = vadd.f32 %v727_v35, %v662_v9 }
  0xaf   : > { %1661 = vmatmul.msk.f32.gmra.mxu3 %vm1112_vm0, %v1103_v20  ;;  %v1043_v10 = vadd.f32 %v1011_v62, %v946_v30 }
  0xb0   : > { %v857_v18 = vadd.f32 %v825_v17, %v759_v55 }
  0xb1   : > { %v1079_v21 = vadd.f32 %v2744_v45, %v1043_v10 }
  0xb2   : > { %v954_v61 = vadd.f32 %v922_v57, %v857_v18 }
  0xb3   : > { %1637 = vmatmul.msk.f32.gmra.mxu0 %vm1112_vm0, %v1079_v21  ;;  %v1226_v59 = vpop.f32.mrf.mxu0  ;;  %v1274_v22 = vpop.f32.mrf.mxu2 }
  0xb4   : > { %v1051_v56 = vadd.f32 %v1019_v29, %v954_v61  ;;  %v1227_v41 = vadd.f32 %v2863_v15, %v1226_v59  ;;  %v1275_v52 = vadd.f32 %v2863_v15, %v1274_v22 }
  0xb6   : > { %v1087_v37 = vadd.f32 %v2744_v45, %v1051_v56  ;;  %1322 = vst [vmem:[%s2870_s16] sm:$0xff] %v1227_v41  ;;  %v1250_v32 = vpop.f32.mrf.mxu1  ;;  %v1298_v43 = vpop.f32.mrf.mxu3 }
  0xb7   : > { %v1251_v38 = vadd.f32 %v2863_v15, %v1250_v32  ;;  %1338 = vst [vmem:[%s2870_s16 + $0x80] sm:$0xff] %v1275_v52  ;;  %v1299_v23 = vadd.f32 %v2863_v15, %v1298_v43 }
  0xb8   : > { %1645 = vmatmul.msk.f32.gmra.mxu1 %vm1112_vm0, %v1087_v37 }
  0xb9   : > { %1330 = vst [vmem:[%s2870_s16 + $0x40] sm:$0xff] %v1251_v38 }
  0xba   : > { %1346 = vst [vmem:[%s2870_s16 + $0xc0] sm:$0xff] %v1299_v23 }
  0xc1   : > { %v1277_v45 = vpop.f32.mrf.mxu2 }
  0xc2   : > { %v1278_v47 = vadd.f32 %v2863_v15, %v1277_v45 }
  0xc4   : > { %1339 = vst [vmem:[%s2870_s16 + $0x88] sm:$0xff] %v1278_v47 }
  0xc5   : > { %v1229_v53 = vpop.f32.mrf.mxu0 }
  0xc6   : > { %v1230_v50 = vadd.f32 %v2863_v15, %v1229_v53  ;;  %v1301_v31 = vpop.f32.mrf.mxu3 }
  0xc7   : > { %v1302_v42 = vadd.f32 %v2863_v15, %v1301_v31 }
  0xc8   : > { %1323 = vst [vmem:[%s2870_s16 + $0x8] sm:$0xff] %v1230_v50 }
  0xc9   : > { %1347 = vst [vmem:[%s2870_s16 + $0xc8] sm:$0xff] %v1302_v42 }
  0xca   : > { %v1253_v24 = vpop.f32.mrf.mxu1 }
  0xcb   : > { %v1254_v60 = vadd.f32 %v2863_v15, %v1253_v24 }
  0xcd   : > { %1331 = vst [vmem:[%s2870_s16 + $0x48] sm:$0xff] %v1254_v60 }
  0xd2   : > { %v1280_v4 = vpop.f32.mrf.mxu2 }
  0xd3   : > { %v1281_v25 = vadd.f32 %v2863_v15, %v1280_v4 }
  0xd5   : > { %1340 = vst [vmem:[%s2870_s16 + $0x90] sm:$0xff] %v1281_v25 }
  0xd7   : > { %v1232_v14 = vpop.f32.mrf.mxu0 }
  0xd8   : > { %v1233_v48 = vadd.f32 %v2863_v15, %v1232_v14  ;;  %v1304_v44 = vpop.f32.mrf.mxu3 }
  0xd9   : > { %v1305_v16 = vadd.f32 %v2863_v15, %v1304_v44 }
  0xda   : > { %1324 = vst [vmem:[%s2870_s16 + $0x10] sm:$0xff] %v1233_v48 }
  0xdb   : > { %1348 = vst [vmem:[%s2870_s16 + $0xd0] sm:$0xff] %v1305_v16  ;;  %v1256_v26 = vpop.f32.mrf.mxu1 }
  0xdc   : > { %v1257_v27 = vadd.f32 %v2863_v15, %v1256_v26 }
  0xde   : > { %1332 = vst [vmem:[%s2870_s16 + $0x50] sm:$0xff] %v1257_v27 }
  0xe6   : > { %v1283_v12 = vpop.f32.mrf.mxu2 }
  0xe7   : > { %v1284_v36 = vadd.f32 %v2863_v15, %v1283_v12 }
  0xe9   : > { %v1235_v2 = vpop.f32.mrf.mxu0  ;;  %1341 = vst [vmem:[%s2870_s16 + $0x98] sm:$0xff] %v1284_v36 }
  0xea   : > { %v1236_v5 = vadd.f32 %v2863_v15, %v1235_v2  ;;  %v1307_v51 = vpop.f32.mrf.mxu3 }
  0xeb   : > { %v1308_v49 = vadd.f32 %v2863_v15, %v1307_v51 }
  0xec   : > { %1325 = vst [vmem:[%s2870_s16 + $0x18] sm:$0xff] %v1236_v5 }
  0xed   : > { %v1259_v0 = vpop.f32.mrf.mxu1  ;;  %1349 = vst [vmem:[%s2870_s16 + $0xd8] sm:$0xff] %v1308_v49 }
  0xee   : > { %v1260_v6 = vadd.f32 %v2863_v15, %v1259_v0 }
  0xf0   : > { %1333 = vst [vmem:[%s2870_s16 + $0x58] sm:$0xff] %v1260_v6 }
  0xf7   : > { %v1286_v40 = vpop.f32.mrf.mxu2 }
  0xf8   : > { %v1287_v34 = vadd.f32 %v2863_v15, %v1286_v40 }
  0xfa   : > { %v1238_v7 = vpop.f32.mrf.mxu0  ;;  %1342 = vst [vmem:[%s2870_s16 + $0xa0] sm:$0xff] %v1287_v34 }
  0xfb   : > { %v1239_v3 = vadd.f32 %v2863_v15, %v1238_v7 }
  0xfc   : > { %v1310_v63 = vpop.f32.mrf.mxu3 }
  0xfd   : > { %1326 = vst [vmem:[%s2870_s16 + $0x20] sm:$0xff] %v1239_v3  ;;  %v1311_v46 = vadd.f32 %v2863_v15, %v1310_v63 }
  0xff   : > { %v1262_v33 = vpop.f32.mrf.mxu1  ;;  %1350 = vst [vmem:[%s2870_s16 + $0xe0] sm:$0xff] %v1311_v46 }
 0x100   : > { %v1263_v39 = vadd.f32 %v2863_v15, %v1262_v33 }
 0x102   : > { %1334 = vst [vmem:[%s2870_s16 + $0x60] sm:$0xff] %v1263_v39 }
 0x109   : > { %v1289_v13 = vpop.f32.mrf.mxu2 }
 0x10a   : > { %v1290_v8 = vadd.f32 %v2863_v15, %v1289_v13 }
 0x10c   : > { %v1241_v54 = vpop.f32.mrf.mxu0  ;;  %1343 = vst [vmem:[%s2870_s16 + $0xa8] sm:$0xff] %v1290_v8 }
 0x10d   : > { %v1242_v19 = vadd.f32 %v2863_v15, %v1241_v54 }
 0x10e   : > { %v1313_v35 = vpop.f32.mrf.mxu3 }
 0x10f   : > { %1327 = vst [vmem:[%s2870_s16 + $0x28] sm:$0xff] %v1242_v19  ;;  %v1314_v58 = vadd.f32 %v2863_v15, %v1313_v35 }
 0x111   : > { %v1265_v28 = vpop.f32.mrf.mxu1  ;;  %1351 = vst [vmem:[%s2870_s16 + $0xe8] sm:$0xff] %v1314_v58 }
 0x112   : > { %v1266_v62 = vadd.f32 %v2863_v15, %v1265_v28 }
 0x114   : > { %1335 = vst [vmem:[%s2870_s16 + $0x68] sm:$0xff] %v1266_v62 }
 0x11b   : > { %v1292_v1 = vpop.f32.mrf.mxu2 }
 0x11c   : > { %v1293_v9 = vadd.f32 %v2863_v15, %v1292_v1 }
 0x11e   : > { %v1244_v17 = vpop.f32.mrf.mxu0  ;;  %1344 = vst [vmem:[%s2870_s16 + $0xb0] sm:$0xff] %v1293_v9 }
 0x11f   : > { %v1245_v20 = vadd.f32 %v2863_v15, %v1244_v17 }
 0x120   : > { %v1316_v30 = vpop.f32.mrf.mxu3 }
 0x121   : > { %1328 = vst [vmem:[%s2870_s16 + $0x30] sm:$0xff] %v1245_v20  ;;  %v1317_v11 = vadd.f32 %v2863_v15, %v1316_v30 }
 0x123   : > { %v1268_v55 = vpop.f32.mrf.mxu1  ;;  %1352 = vst [vmem:[%s2870_s16 + $0xf0] sm:$0xff] %v1317_v11 }
 0x124   : > { %v1269_v57 = vadd.f32 %v2863_v15, %v1268_v55 }
 0x126   : > { %1336 = vst [vmem:[%s2870_s16 + $0x70] sm:$0xff] %v1269_v57 }
 0x12d   : > { %v1295_v10 = vpop.f32.mrf.mxu2 }
 0x12e   : > { %v1296_v18 = vadd.f32 %v2863_v15, %v1295_v10 }
 0x130   : > { %v1247_v29 = vpop.f32.mrf.mxu0  ;;  %1345 = vst [vmem:[%s2870_s16 + $0xb8] sm:$0xff] %v1296_v18 }
 0x131   : > { %v1248_v21 = vadd.f32 %v2863_v15, %v1247_v29 }
 0x132   : > { %v1319_v61 = vpop.f32.mrf.mxu3 }
 0x133   : > { %1329 = vst [vmem:[%s2870_s16 + $0x38] sm:$0xff] %v1248_v21  ;;  %v1320_v59 = vadd.f32 %v2863_v15, %v1319_v61 }
 0x135   : > { %v1271_v22 = vpop.f32.mrf.mxu1  ;;  %1353 = vst [vmem:[%s2870_s16 + $0xf8] sm:$0xff] %v1320_v59 }
 0x136   : > { %v1272_v56 = vadd.f32 %v2863_v15, %v1271_v22 }
 0x138   : > { %1337 = vst [vmem:[%s2870_s16 + $0x78] sm:$0xff] %v1272_v56 }
 0x139   : > { %1754 = shalt.err (!%p1751_p3)
}
 0x13a   : > { %s1791_s12 = smov 128   ;;  %s1792_s15 = smov 8  }
 0x13b   : > { %1681 = dma.vmem_to_hbm [thread:$0]  (%p1861_p5), %s1368_s30, 4096, %s1370_s6, %s1355_s22, %s1791_s12, %s1791_s12, %s1792_s15  }
 0x13c PF: > { %p1687_p4 = scmp.ge.s32.totalorder %s1789_s21, 2  ;;  %s1384_s16 = sand.u32 1, %s1777_s18  }
 0x13d   : > { %s1385_s17 = scalar_lea.sflag [#allocation3], %s1384_s16 }
 0x13e   : > { %p1684_p7 = pnand %p1687_p4, %p1865_p6 }
 0x140   : > { %p1685_p8 = pneg %p1684_p7 }
 0x142   : > { %1772 = dma.done.wait (%p1685_p8), %s1385_s17, 4096  }
 0x143   : > { %1774 = vsyncadd (%p1685_p8), %s1385_s17, 4294963200  ;;  %p15_p9 = scmp.ge.s32.totalorder %s1848_s24, 4   ;;  %s3107_s18 = smov %s1781_s19 }
 0x144   : > { %s3108_s19 = smov %s1785_s20  ;;  %s3109_s20 = smov %s1859_s27 }
 0x145   : > { %s3110_s21 = smov %s1848_s24  ;;  %17 = sbr.rel (!%p15_p9) target bundleno = 3 (0x3), region = 77 }
 0x14a   :  { %1391 = vsyncpa [#allocation3], 1 }
 0x14b   :  { %1393 = vsyncpa [#allocation3 + $0x1], 1 }

</bundles_post_ra>
